<compile_context>
chip_gen: v5e
topology: v5e:2x2
jax: 0.10.0
libtpu: 0.0.40
codegen_flags: <defaults>
</compile_context>

<pallas_src>
import jax
import jax.numpy as jnp
from jax.experimental import pallas as pl
from jax.experimental.pallas import tpu as pltpu

DIM = 32             # hidden width of the PyTorch module
LANE = 128           # TPU lane width — feature / hidden / class dims padded to this
BN_EPS = 1e-5        # torch.nn.BatchNorm1d default eps
NEG_INF = -1e30      # bias on padded class lanes so they vanish in log_softmax
GRAPHS_PER_STEP = 4  # graphs stacked per grid step -> M = 4 * n_pad = 128 MXU rows


def _round_up(n, m):
    return ((n + m - 1) // m) * m


def _pad2(a, rows, cols, fill=0.0):
    return jnp.pad(a, ((0, rows - a.shape[0]), (0, cols - a.shape[1])),
                   constant_values=fill)


def _pad_row(v, fill=0.0):
    return jnp.pad(v, (0, LANE - v.shape[0]), constant_values=fill).astype(jnp.float32)


# ---------------------------------------------------------------------------
# Pallas kernel: GRAPHS_PER_STEP graphs per grid step.
# ---------------------------------------------------------------------------
def gin_kernel(a_ref, x_ref, w_ref, b_ref, out_ref):
    # a_ref : (M, M)        bf16  block-diagonal (1+eps)*I + A for this step's graphs
    # x_ref : (M, 128)      bf16  stacked node features
    # w_ref : (8, 128, 128) bf16  [w1a, w1b, w2a, w2b, w3a, w3b, wf1, wf2]
    # b_ref : (16, 128)     f32   [b1a,b1b,s1,t1, b2a,b2b,s2,t2, b3a,b3b,s3,t3, bf1,bf2, 0,0]
    A = a_ref[...]
    h = x_ref[...]

    def gin_layer(h_in, wi, bi):
        # GINConv: nn((1+eps)*x_i + sum_{j->i} x_j) == nn(A @ X); outer ReLU; BN affine.
        agg = jnp.dot(A, h_in, preferred_element_type=jnp.float32)
        z = jnp.dot(agg.astype(jnp.bfloat16), w_ref[wi],
                    preferred_element_type=jnp.float32) + b_ref[bi:bi + 1, :]
        z = jnp.maximum(z, 0.0)                                       # ReLU inside MLP
        z = jnp.dot(z.astype(jnp.bfloat16), w_ref[wi + 1],
                    preferred_element_type=jnp.float32) + b_ref[bi + 1:bi + 2, :]
        z = jnp.maximum(z, 0.0)                                       # outer F.relu
        z = z * b_ref[bi + 2:bi + 3, :] + b_ref[bi + 3:bi + 4, :]     # BatchNorm1d (inference)
        return z.astype(jnp.bfloat16)

    h = gin_layer(h, 0, 0)
    h = gin_layer(h, 2, 4)
    h = gin_layer(h, 4, 8)

    # fc1 + ReLU; dropout(p=0.5) is identity at inference.
    z = jnp.dot(h, w_ref[6], preferred_element_type=jnp.float32) + b_ref[12:13, :]
    z = jnp.maximum(z, 0.0)
    # fc2 — padded class lanes carry a -1e30 bias so exp() kills them below.
    logits = jnp.dot(z.astype(jnp.bfloat16), w_ref[7],
                     preferred_element_type=jnp.float32) + b_ref[13:14, :]

    # log_softmax over classes in f32; lane-dense (M, 128) unmasked full-width store.
    m = jnp.max(logits, axis=-1, keepdims=True)
    s = logits - m
    lse = jnp.log(jnp.sum(jnp.exp(s), axis=-1, keepdims=True))
    out_ref[...] = s - lse


# ---------------------------------------------------------------------------
# JAX-side glue: padding / packing, pallas_call wrapper, reference, init.
# ---------------------------------------------------------------------------
def prepare_operands(a_agg, x, params, graphs_per_step=GRAPHS_PER_STEP):
    G, N, _ = a_agg.shape
    f_in = x.shape[-1]
    n_cls = params["head"][3].shape[0]
    assert f_in <= LANE and DIM <= LANE and n_cls <= LANE, \
        "feature/hidden/class dims above 128 need a lane-tiled weight path"

    n_pad = _round_up(N, 16)              # sublane-friendly for bf16 packing
    B = graphs_per_step
    G_pad = _round_up(G, B)
    S = G_pad // B
    M = B * n_pad                         # MXU row count per step (multiple of 8)

    a_p = jnp.pad(a_agg, ((0, G_pad - G), (0, n_pad - N), (0, n_pad - N)))
    x_p = jnp.pad(x, ((0, G_pad - G), (0, n_pad - N), (0, LANE - f_in)))

    # Block-diagonal aggregation: one (M, M) tile per grid step (cross-graph blocks = 0).
    a_blk = a_p.reshape(S, B, n_pad, n_pad)
    a_steps = jnp.zeros((S, M, M), jnp.float32)
    for b in range(B):
        sl = slice(b * n_pad, (b + 1) * n_pad)
        a_steps = a_steps.at[:, sl, sl].set(a_blk[:, b])
    a_steps = a_steps.astype(jnp.bfloat16)
    x_steps = x_p.reshape(S, M, LANE).astype(jnp.bfloat16)

    # Pack 8 weights -> (8,128,128) bf16 ; 14 bias/BN rows -> (16,128) f32.
    w_list, b_list = [], []
    for name in ("layer1", "layer2", "layer3"):
        wa, ba, wb, bb, gamma, beta, mean, var = params[name]
        scale = gamma / jnp.sqrt(var + BN_EPS)
        shift = beta - mean * scale
        w_list += [_pad2(wa, LANE, LANE).astype(jnp.bfloat16),
                   _pad2(wb, LANE, LANE).astype(jnp.bfloat16)]
        b_list += [_pad_row(ba), _pad_row(bb), _pad_row(scale), _pad_row(shift)]
    wf1, bfc1, wf2, bfc2 = params["head"]
    w_list += [_pad2(wf1, LANE, LANE).astype(jnp.bfloat16),
               _pad2(wf2, LANE, LANE).astype(jnp.bfloat16)]
    b_list += [_pad_row(bfc1), _pad_row(bfc2, fill=NEG_INF)]      # kill padded class lanes
    b_list += [jnp.zeros((LANE,), jnp.float32)] * 2               # pad to 16 sublane rows
    w_stack = jnp.stack(w_list)
    b_stack = jnp.stack(b_list)
    return (a_steps, x_steps, w_stack, b_stack), (S, M, n_pad)


def gin_forward(a_agg, x, params):
    """Full GINConvNet2 inference forward for a batch of graphs in one pallas_call."""
    G, N = a_agg.shape[0], a_agg.shape[1]
    n_cls = params["head"][3].shape[0]
    ops, (S, M, n_pad) = prepare_operands(a_agg, x, params)
    a_steps, x_steps, w_stack, b_stack = ops

    # Advisory cost so XLA overlaps the padding/cast prep and output slice with the call.
    flops = S * (3 * 2 * M * M * LANE + 8 * 2 * M * LANE * LANE)
    bytes_accessed = (a_steps.size * 2 + x_steps.size * 2 + w_stack.size * 2
                      + b_stack.size * 4 + S * M * LANE * 4)
    cost = pl.CostEstimate(flops=flops,
                           transcendentals=S * M * (LANE + 1),
                           bytes_accessed=bytes_accessed)

    out = pl.pallas_call(
        gin_kernel,
        out_shape=jax.ShapeDtypeStruct((S, M, LANE), jnp.float32),
        grid_spec=pltpu.PrefetchScalarGridSpec(
            num_scalar_prefetch=0,
            grid=(S,),
            in_specs=[
                pl.BlockSpec((None, M, M), lambda s: (s, 0, 0)),     # per-step block-diag A
                pl.BlockSpec((None, M, LANE), lambda s: (s, 0, 0)),  # per-step node features
                pl.BlockSpec((8, LANE, LANE), lambda s: (0, 0, 0)),  # shared packed weights
                pl.BlockSpec((16, LANE), lambda s: (0, 0)),          # shared packed bias/BN rows
            ],
            out_specs=pl.BlockSpec((None, M, LANE), lambda s: (s, 0, 0)),
        ),
        compiler_params=pltpu.CompilerParams(
            dimension_semantics=("parallel",),        # >= 2 steps per v7x TensorCore
            vmem_limit_bytes=32 * 1024 * 1024,        # tiny buffers; fits all generations
        ),
        cost_estimate=cost,
    )(a_steps, x_steps, w_stack, b_stack)

    # Un-pack (S, M, 128) -> (G, N, n_cls).  Padded class lanes hold ~-1e30 and padded
    # node rows / pad graphs are garbage — they MUST be dropped here, never consumed.
    return out.reshape(S * GRAPHS_PER_STEP, n_pad, LANE)[:G, :N, :n_cls]


def reference_forward(a_agg, x, params):
    """Plain-JAX per-graph reference mirroring the kernel's bf16-matmul / f32-elementwise mix."""
    def dot(a, b):
        return jnp.dot(a.astype(jnp.bfloat16), b.astype(jnp.bfloat16),
                       preferred_element_type=jnp.float32)

    def gin_layer(A, h, p):
        wa, ba, wb, bb, gamma, beta, mean, var = p
        scale = gamma / jnp.sqrt(var + BN_EPS)
        shift = beta - mean * scale
        agg = dot(A, h)
        z = jnp.maximum(dot(agg, wa) + ba, 0.0)
        z = jnp.maximum(dot(z, wb) + bb, 0.0)
        return z * scale + shift

    def one_graph(A, h):
        h = gin_layer(A, h, params["layer1"])
        h = gin_layer(A, h, params["layer2"])
        h = gin_layer(A, h, params["layer3"])
        wf1, bfc1, wf2, bfc2 = params["head"]
        h = jnp.maximum(dot(h, wf1) + bfc1, 0.0)
        logits = dot(h, wf2) + bfc2
        m = jnp.max(logits, axis=-1, keepdims=True)
        s = logits - m
        return s - jnp.log(jnp.sum(jnp.exp(s), axis=-1, keepdims=True))

    return jnp.stack([one_graph(a_agg[g], x[g]) for g in range(a_agg.shape[0])])


def build_gin_aggregation(edge_index, num_nodes, eps=0.0):
    """Dense (1+eps)*I + A with A[i, j] = #edges j -> i (GINConv sum aggregation)."""
    src, dst = edge_index[0], edge_index[1]
    A = jnp.zeros((num_nodes, num_nodes), jnp.float32).at[dst, src].add(1.0)
    return A + (1.0 + eps) * jnp.eye(num_nodes, dtype=jnp.float32)


def init_params(key, num_features, dim, num_classes):
    ks = jax.random.split(key, 20)

    def w(k, shape):
        return (0.2 * jax.random.normal(k, shape)).astype(jnp.float32)

    def bn(k):
        k1, k2, k3, k4 = jax.random.split(k, 4)
        gamma = (1.0 + 0.1 * jax.random.normal(k1, (dim,))).astype(jnp.float32)
        beta = (0.1 * jax.random.normal(k2, (dim,))).astype(jnp.float32)
        mean = (0.1 * jax.random.normal(k3, (dim,))).astype(jnp.float32)
        var = (1.0 + 0.1 * jnp.abs(jax.random.normal(k4, (dim,)))).astype(jnp.float32)
        return gamma, beta, mean, var

    return {
        "layer1": (w(ks[0], (num_features, dim)), w(ks[1], (dim,)),
                   w(ks[2], (dim, dim)), w(ks[3], (dim,))) + bn(ks[4]),
        "layer2": (w(ks[5], (dim, dim)), w(ks[6], (dim,)),
                   w(ks[7], (dim, dim)), w(ks[8], (dim,))) + bn(ks[9]),
        "layer3": (w(ks[10], (dim, dim)), w(ks[11], (dim,)),
                   w(ks[12], (dim, dim)), w(ks[13], (dim,))) + bn(ks[14]),
        "head": (w(ks[15], (dim, dim)), w(ks[16], (dim,)),
                 w(ks[17], (dim, num_classes)), w(ks[18], (num_classes,))),
    }


if __name__ == "__main__":
    key = jax.random.PRNGKey(0)
    # graphs, nodes/graph, features, classes, edges/graph (16 graphs -> 4 grid steps of 4)
    G, N, F_IN, C, E = 16, 32, 16, 7, 96

    keys = jax.random.split(key, 4)
    x = jax.random.normal(keys[0], (G, N, F_IN), jnp.float32)
    src = jax.random.randint(keys[1], (G, E), 0, N).astype(jnp.int32)
    dst = jax.random.randint(keys[2], (G, E), 0, N).astype(jnp.int32)
    a_agg = jnp.stack([build_gin_aggregation(jnp.stack([src[g], dst[g]], axis=0), N)
                       for g in range(G)])

    params = init_params(keys[3], F_IN, DIM, C)

    out = gin_forward(a_agg, x, params)
    out = jax.block_until_ready(out)

    # NOTE: reference applies the same bf16 matmul casts, so this validates the kernel
    # against its intended bf16/f32 numerics (PyTorch-f32 fidelity is within bf16 drift).
    ref = reference_forward(a_agg, x, params)
    assert out.shape == (G, N, C)
    assert bool(jnp.all(jnp.isfinite(out))), "non-finite values in kernel output"
    assert jnp.allclose(out, ref, atol=2e-3, rtol=2e-3), "mismatch vs JAX reference"

    print("KERNEL_OK")
</pallas_src>

<mosaic_0001>
module attributes {stable_mosaic.version = 11 : i64} {
  func.func @gin_kernel(%arg0: i32, %arg1: memref<1x128x128xbf16, #tpu.memory_space<vmem>>, %arg2: memref<1x128x128xbf16, #tpu.memory_space<vmem>>, %arg3: memref<8x128x128xbf16, #tpu.memory_space<vmem>>, %arg4: memref<16x128xf32, #tpu.memory_space<vmem>>, %arg5: memref<1x128x128xf32, #tpu.memory_space<vmem>>) attributes {dimension_semantics = [#tpu.dimension_semantics<parallel>], iteration_bounds = array<i64: 4>, scalar_prefetch = 0 : i64, scratch_operands = 0 : i64, tpu.core_type = #tpu.core_type<tc>, window_params = [{transform_indices = @transform_0, window_bounds = array<i64: 1, 128, 128>}, {transform_indices = @transform_1, window_bounds = array<i64: 1, 128, 128>}, {pipeline_mode = #tpu.pipeline_mode<synchronous>, transform_indices = @transform_2, window_bounds = array<i64: 8, 128, 128>}, {pipeline_mode = #tpu.pipeline_mode<synchronous>, transform_indices = @transform_3, window_bounds = array<i64: 16, 128>}, {transform_indices = @transform_4, window_bounds = array<i64: 1, 128, 128>}]} {
    %c0 = arith.constant 0 : index
    %c0_0 = arith.constant 0 : index
    %c0_1 = arith.constant 0 : index
    %0 = vector.load %arg1[%c0, %c0_0, %c0_1] : memref<1x128x128xbf16, #tpu.memory_space<vmem>>, vector<1x128x128xbf16>
    %1 = vector.shape_cast %0 : vector<1x128x128xbf16> to vector<128x128xbf16>
    %c0_2 = arith.constant 0 : index
    %c0_3 = arith.constant 0 : index
    %c0_4 = arith.constant 0 : index
    %2 = vector.load %arg2[%c0_2, %c0_3, %c0_4] : memref<1x128x128xbf16, #tpu.memory_space<vmem>>, vector<1x128x128xbf16>
    %3 = vector.shape_cast %2 : vector<1x128x128xbf16> to vector<128x128xbf16>
    %cst = arith.constant dense<0.000000e+00> : vector<128x128xf32>
    %4 = tpu.matmul %1, %3, %cst {dimension_numbers = #tpu.dot_dimension_numbers<[1], [0], [0], [1], [0, 0, 1, 1], [], []>} : vector<128x128xbf16>, vector<128x128xbf16>, vector<128x128xf32> -> vector<128x128xf32>
    %5 = arith.truncf %4 : vector<128x128xf32> to vector<128x128xbf16>
    %c0_5 = arith.constant 0 : index
    %c0_6 = arith.constant 0 : index
    %c0_7 = arith.constant 0 : index
    %6 = vector.load %arg3[%c0_5, %c0_6, %c0_7] : memref<8x128x128xbf16, #tpu.memory_space<vmem>>, vector<1x128x128xbf16>
    %7 = vector.shape_cast %6 : vector<1x128x128xbf16> to vector<128x128xbf16>
    %cst_8 = arith.constant dense<0.000000e+00> : vector<128x128xf32>
    %8 = tpu.matmul %5, %7, %cst_8 {dimension_numbers = #tpu.dot_dimension_numbers<[1], [0], [0], [1], [0, 0, 1, 1], [], []>} : vector<128x128xbf16>, vector<128x128xbf16>, vector<128x128xf32> -> vector<128x128xf32>
    %c0_9 = arith.constant 0 : index
    %c0_10 = arith.constant 0 : index
    %9 = vector.load %arg4[%c0_9, %c0_10] : memref<16x128xf32, #tpu.memory_space<vmem>>, vector<1x128xf32>
    %10 = vector.broadcast %9 : vector<1x128xf32> to vector<128x128xf32>
    %11 = arith.addf %8, %10 : vector<128x128xf32>
    %cst_11 = arith.constant 0.000000e+00 : f32
    %12 = vector.broadcast %cst_11 : f32 to vector<128x128xf32>
    %13 = arith.maximumf %11, %12 : vector<128x128xf32>
    %14 = arith.truncf %13 : vector<128x128xf32> to vector<128x128xbf16>
    %c1 = arith.constant 1 : index
    %c0_12 = arith.constant 0 : index
    %c0_13 = arith.constant 0 : index
    %15 = vector.load %arg3[%c1, %c0_12, %c0_13] : memref<8x128x128xbf16, #tpu.memory_space<vmem>>, vector<1x128x128xbf16>
    %16 = vector.shape_cast %15 : vector<1x128x128xbf16> to vector<128x128xbf16>
    %cst_14 = arith.constant dense<0.000000e+00> : vector<128x128xf32>
    %17 = tpu.matmul %14, %16, %cst_14 {dimension_numbers = #tpu.dot_dimension_numbers<[1], [0], [0], [1], [0, 0, 1, 1], [], []>} : vector<128x128xbf16>, vector<128x128xbf16>, vector<128x128xf32> -> vector<128x128xf32>
    %c1_15 = arith.constant 1 : index
    %c0_16 = arith.constant 0 : index
    %18 = vector.load %arg4[%c1_15, %c0_16] : memref<16x128xf32, #tpu.memory_space<vmem>>, vector<1x128xf32>
    %19 = vector.broadcast %18 : vector<1x128xf32> to vector<128x128xf32>
    %20 = arith.addf %17, %19 : vector<128x128xf32>
    %cst_17 = arith.constant 0.000000e+00 : f32
    %21 = vector.broadcast %cst_17 : f32 to vector<128x128xf32>
    %22 = arith.maximumf %20, %21 : vector<128x128xf32>
    %c2 = arith.constant 2 : index
    %c0_18 = arith.constant 0 : index
    %23 = vector.load %arg4[%c2, %c0_18] : memref<16x128xf32, #tpu.memory_space<vmem>>, vector<1x128xf32>
    %24 = vector.broadcast %23 : vector<1x128xf32> to vector<128x128xf32>
    %25 = arith.mulf %22, %24 : vector<128x128xf32>
    %c3 = arith.constant 3 : index
    %c0_19 = arith.constant 0 : index
    %26 = vector.load %arg4[%c3, %c0_19] : memref<16x128xf32, #tpu.memory_space<vmem>>, vector<1x128xf32>
    %27 = vector.broadcast %26 : vector<1x128xf32> to vector<128x128xf32>
    %28 = arith.addf %25, %27 : vector<128x128xf32>
    %29 = arith.truncf %28 : vector<128x128xf32> to vector<128x128xbf16>
    %cst_20 = arith.constant dense<0.000000e+00> : vector<128x128xf32>
    %30 = tpu.matmul %1, %29, %cst_20 {dimension_numbers = #tpu.dot_dimension_numbers<[1], [0], [0], [1], [0, 0, 1, 1], [], []>} : vector<128x128xbf16>, vector<128x128xbf16>, vector<128x128xf32> -> vector<128x128xf32>
    %31 = arith.truncf %30 : vector<128x128xf32> to vector<128x128xbf16>
    %c2_21 = arith.constant 2 : index
    %c0_22 = arith.constant 0 : index
    %c0_23 = arith.constant 0 : index
    %32 = vector.load %arg3[%c2_21, %c0_22, %c0_23] : memref<8x128x128xbf16, #tpu.memory_space<vmem>>, vector<1x128x128xbf16>
    %33 = vector.shape_cast %32 : vector<1x128x128xbf16> to vector<128x128xbf16>
    %cst_24 = arith.constant dense<0.000000e+00> : vector<128x128xf32>
    %34 = tpu.matmul %31, %33, %cst_24 {dimension_numbers = #tpu.dot_dimension_numbers<[1], [0], [0], [1], [0, 0, 1, 1], [], []>} : vector<128x128xbf16>, vector<128x128xbf16>, vector<128x128xf32> -> vector<128x128xf32>
    %c4 = arith.constant 4 : index
    %c0_25 = arith.constant 0 : index
    %35 = vector.load %arg4[%c4, %c0_25] : memref<16x128xf32, #tpu.memory_space<vmem>>, vector<1x128xf32>
    %36 = vector.broadcast %35 : vector<1x128xf32> to vector<128x128xf32>
    %37 = arith.addf %34, %36 : vector<128x128xf32>
    %cst_26 = arith.constant 0.000000e+00 : f32
    %38 = vector.broadcast %cst_26 : f32 to vector<128x128xf32>
    %39 = arith.maximumf %37, %38 : vector<128x128xf32>
    %40 = arith.truncf %39 : vector<128x128xf32> to vector<128x128xbf16>
    %c3_27 = arith.constant 3 : index
    %c0_28 = arith.constant 0 : index
    %c0_29 = arith.constant 0 : index
    %41 = vector.load %arg3[%c3_27, %c0_28, %c0_29] : memref<8x128x128xbf16, #tpu.memory_space<vmem>>, vector<1x128x128xbf16>
    %42 = vector.shape_cast %41 : vector<1x128x128xbf16> to vector<128x128xbf16>
    %cst_30 = arith.constant dense<0.000000e+00> : vector<128x128xf32>
    %43 = tpu.matmul %40, %42, %cst_30 {dimension_numbers = #tpu.dot_dimension_numbers<[1], [0], [0], [1], [0, 0, 1, 1], [], []>} : vector<128x128xbf16>, vector<128x128xbf16>, vector<128x128xf32> -> vector<128x128xf32>
    %c5 = arith.constant 5 : index
    %c0_31 = arith.constant 0 : index
    %44 = vector.load %arg4[%c5, %c0_31] : memref<16x128xf32, #tpu.memory_space<vmem>>, vector<1x128xf32>
    %45 = vector.broadcast %44 : vector<1x128xf32> to vector<128x128xf32>
    %46 = arith.addf %43, %45 : vector<128x128xf32>
    %cst_32 = arith.constant 0.000000e+00 : f32
    %47 = vector.broadcast %cst_32 : f32 to vector<128x128xf32>
    %48 = arith.maximumf %46, %47 : vector<128x128xf32>
    %c6 = arith.constant 6 : index
    %c0_33 = arith.constant 0 : index
    %49 = vector.load %arg4[%c6, %c0_33] : memref<16x128xf32, #tpu.memory_space<vmem>>, vector<1x128xf32>
    %50 = vector.broadcast %49 : vector<1x128xf32> to vector<128x128xf32>
    %51 = arith.mulf %48, %50 : vector<128x128xf32>
    %c7 = arith.constant 7 : index
    %c0_34 = arith.constant 0 : index
    %52 = vector.load %arg4[%c7, %c0_34] : memref<16x128xf32, #tpu.memory_space<vmem>>, vector<1x128xf32>
    %53 = vector.broadcast %52 : vector<1x128xf32> to vector<128x128xf32>
    %54 = arith.addf %51, %53 : vector<128x128xf32>
    %55 = arith.truncf %54 : vector<128x128xf32> to vector<128x128xbf16>
    %cst_35 = arith.constant dense<0.000000e+00> : vector<128x128xf32>
    %56 = tpu.matmul %1, %55, %cst_35 {dimension_numbers = #tpu.dot_dimension_numbers<[1], [0], [0], [1], [0, 0, 1, 1], [], []>} : vector<128x128xbf16>, vector<128x128xbf16>, vector<128x128xf32> -> vector<128x128xf32>
    %57 = arith.truncf %56 : vector<128x128xf32> to vector<128x128xbf16>
    %c4_36 = arith.constant 4 : index
    %c0_37 = arith.constant 0 : index
    %c0_38 = arith.constant 0 : index
    %58 = vector.load %arg3[%c4_36, %c0_37, %c0_38] : memref<8x128x128xbf16, #tpu.memory_space<vmem>>, vector<1x128x128xbf16>
    %59 = vector.shape_cast %58 : vector<1x128x128xbf16> to vector<128x128xbf16>
    %cst_39 = arith.constant dense<0.000000e+00> : vector<128x128xf32>
    %60 = tpu.matmul %57, %59, %cst_39 {dimension_numbers = #tpu.dot_dimension_numbers<[1], [0], [0], [1], [0, 0, 1, 1], [], []>} : vector<128x128xbf16>, vector<128x128xbf16>, vector<128x128xf32> -> vector<128x128xf32>
    %c8 = arith.constant 8 : index
    %c0_40 = arith.constant 0 : index
    %61 = vector.load %arg4[%c8, %c0_40] : memref<16x128xf32, #tpu.memory_space<vmem>>, vector<1x128xf32>
    %62 = vector.broadcast %61 : vector<1x128xf32> to vector<128x128xf32>
    %63 = arith.addf %60, %62 : vector<128x128xf32>
    %cst_41 = arith.constant 0.000000e+00 : f32
    %64 = vector.broadcast %cst_41 : f32 to vector<128x128xf32>
    %65 = arith.maximumf %63, %64 : vector<128x128xf32>
    %66 = arith.truncf %65 : vector<128x128xf32> to vector<128x128xbf16>
    %c5_42 = arith.constant 5 : index
    %c0_43 = arith.constant 0 : index
    %c0_44 = arith.constant 0 : index
    %67 = vector.load %arg3[%c5_42, %c0_43, %c0_44] : memref<8x128x128xbf16, #tpu.memory_space<vmem>>, vector<1x128x128xbf16>
    %68 = vector.shape_cast %67 : vector<1x128x128xbf16> to vector<128x128xbf16>
    %cst_45 = arith.constant dense<0.000000e+00> : vector<128x128xf32>
    %69 = tpu.matmul %66, %68, %cst_45 {dimension_numbers = #tpu.dot_dimension_numbers<[1], [0], [0], [1], [0, 0, 1, 1], [], []>} : vector<128x128xbf16>, vector<128x128xbf16>, vector<128x128xf32> -> vector<128x128xf32>
    %c9 = arith.constant 9 : index
    %c0_46 = arith.constant 0 : index
    %70 = vector.load %arg4[%c9, %c0_46] : memref<16x128xf32, #tpu.memory_space<vmem>>, vector<1x128xf32>
    %71 = vector.broadcast %70 : vector<1x128xf32> to vector<128x128xf32>
    %72 = arith.addf %69, %71 : vector<128x128xf32>
    %cst_47 = arith.constant 0.000000e+00 : f32
    %73 = vector.broadcast %cst_47 : f32 to vector<128x128xf32>
    %74 = arith.maximumf %72, %73 : vector<128x128xf32>
    %c10 = arith.constant 10 : index
    %c0_48 = arith.constant 0 : index
    %75 = vector.load %arg4[%c10, %c0_48] : memref<16x128xf32, #tpu.memory_space<vmem>>, vector<1x128xf32>
    %76 = vector.broadcast %75 : vector<1x128xf32> to vector<128x128xf32>
    %77 = arith.mulf %74, %76 : vector<128x128xf32>
    %c11 = arith.constant 11 : index
    %c0_49 = arith.constant 0 : index
    %78 = vector.load %arg4[%c11, %c0_49] : memref<16x128xf32, #tpu.memory_space<vmem>>, vector<1x128xf32>
    %79 = vector.broadcast %78 : vector<1x128xf32> to vector<128x128xf32>
    %80 = arith.addf %77, %79 : vector<128x128xf32>
    %81 = arith.truncf %80 : vector<128x128xf32> to vector<128x128xbf16>
    %c6_50 = arith.constant 6 : index
    %c0_51 = arith.constant 0 : index
    %c0_52 = arith.constant 0 : index
    %82 = vector.load %arg3[%c6_50, %c0_51, %c0_52] : memref<8x128x128xbf16, #tpu.memory_space<vmem>>, vector<1x128x128xbf16>
    %83 = vector.shape_cast %82 : vector<1x128x128xbf16> to vector<128x128xbf16>
    %cst_53 = arith.constant dense<0.000000e+00> : vector<128x128xf32>
    %84 = tpu.matmul %81, %83, %cst_53 {dimension_numbers = #tpu.dot_dimension_numbers<[1], [0], [0], [1], [0, 0, 1, 1], [], []>} : vector<128x128xbf16>, vector<128x128xbf16>, vector<128x128xf32> -> vector<128x128xf32>
    %c12 = arith.constant 12 : index
    %c0_54 = arith.constant 0 : index
    %85 = vector.load %arg4[%c12, %c0_54] : memref<16x128xf32, #tpu.memory_space<vmem>>, vector<1x128xf32>
    %86 = vector.broadcast %85 : vector<1x128xf32> to vector<128x128xf32>
    %87 = arith.addf %84, %86 : vector<128x128xf32>
    %cst_55 = arith.constant 0.000000e+00 : f32
    %88 = vector.broadcast %cst_55 : f32 to vector<128x128xf32>
    %89 = arith.maximumf %87, %88 : vector<128x128xf32>
    %90 = arith.truncf %89 : vector<128x128xf32> to vector<128x128xbf16>
    %c7_56 = arith.constant 7 : index
    %c0_57 = arith.constant 0 : index
    %c0_58 = arith.constant 0 : index
    %91 = vector.load %arg3[%c7_56, %c0_57, %c0_58] : memref<8x128x128xbf16, #tpu.memory_space<vmem>>, vector<1x128x128xbf16>
    %92 = vector.shape_cast %91 : vector<1x128x128xbf16> to vector<128x128xbf16>
    %cst_59 = arith.constant dense<0.000000e+00> : vector<128x128xf32>
    %93 = tpu.matmul %90, %92, %cst_59 {dimension_numbers = #tpu.dot_dimension_numbers<[1], [0], [0], [1], [0, 0, 1, 1], [], []>} : vector<128x128xbf16>, vector<128x128xbf16>, vector<128x128xf32> -> vector<128x128xf32>
    %c13 = arith.constant 13 : index
    %c0_60 = arith.constant 0 : index
    %94 = vector.load %arg4[%c13, %c0_60] : memref<16x128xf32, #tpu.memory_space<vmem>>, vector<1x128xf32>
    %95 = vector.broadcast %94 : vector<1x128xf32> to vector<128x128xf32>
    %96 = arith.addf %93, %95 : vector<128x128xf32>
    %cst_61 = arith.constant dense<0xFF800000> : vector<128xf32>
    %97 = vector.multi_reduction <maximumf>, %96, %cst_61 [1] : vector<128x128xf32> to vector<128xf32>
    %98 = vector.shape_cast %97 : vector<128xf32> to vector<128x1xf32>
    %99 = vector.broadcast %98 : vector<128x1xf32> to vector<128x128xf32>
    %100 = arith.subf %96, %99 : vector<128x128xf32>
    %101 = math.exp %100 : vector<128x128xf32>
    %cst_62 = arith.constant dense<0.000000e+00> : vector<128xf32>
    %102 = vector.multi_reduction <add>, %101, %cst_62 [1] : vector<128x128xf32> to vector<128xf32>
    %103 = vector.shape_cast %102 : vector<128xf32> to vector<128x1xf32>
    %104 = math.log %103 : vector<128x1xf32>
    %105 = vector.broadcast %104 : vector<128x1xf32> to vector<128x128xf32>
    %106 = arith.subf %100, %105 : vector<128x128xf32>
    %c0_63 = arith.constant 0 : index
    %c0_64 = arith.constant 0 : index
    %c0_65 = arith.constant 0 : index
    %107 = vector.load %arg5[%c0_63, %c0_64, %c0_65] : memref<1x128x128xf32, #tpu.memory_space<vmem>>, vector<1x128x128xf32>
    %108 = vector.shape_cast %107 : vector<1x128x128xf32> to vector<128x128xf32>
    %109 = vector.shape_cast %106 : vector<128x128xf32> to vector<1x128x128xf32>
    tpu.vector_store %arg5[%c0_63, %c0_64, %c0_65], %109 {strides = array<i32>} : memref<1x128x128xf32, #tpu.memory_space<vmem>>, vector<1x128x128xf32>,
    return
  }
  func.func @transform_0(%arg0: i32) -> (i32, i32, i32) {
    %c0_i32 = arith.constant 0 : i32
    %c0_i32_0 = arith.constant 0 : i32
    %c0_i32_1 = arith.constant 0 : i32
    return %arg0, %c0_i32, %c0_i32_0 : i32, i32, i32
  }
  func.func @transform_1(%arg0: i32) -> (i32, i32, i32) {
    %c0_i32 = arith.constant 0 : i32
    %c0_i32_0 = arith.constant 0 : i32
    %c0_i32_1 = arith.constant 0 : i32
    return %arg0, %c0_i32, %c0_i32_0 : i32, i32, i32
  }
  func.func @transform_2(%arg0: i32) -> (i32, i32, i32) {
    %c0_i32 = arith.constant 0 : i32
    %c0_i32_0 = arith.constant 0 : i32
    %c0_i32_1 = arith.constant 0 : i32
    %c0_i32_2 = arith.constant 0 : i32
    return %c0_i32, %c0_i32_0, %c0_i32_1 : i32, i32, i32
  }
  func.func @transform_3(%arg0: i32) -> (i32, i32) {
    %c0_i32 = arith.constant 0 : i32
    %c0_i32_0 = arith.constant 0 : i32
    %c0_i32_1 = arith.constant 0 : i32
    return %c0_i32, %c0_i32_0 : i32, i32
  }
  func.func @transform_4(%arg0: i32) -> (i32, i32, i32) {
    %c0_i32 = arith.constant 0 : i32
    %c0_i32_0 = arith.constant 0 : i32
    %c0_i32_1 = arith.constant 0 : i32
    return %arg0, %c0_i32, %c0_i32_0 : i32, i32, i32
  }
}

</mosaic_0001>

<bundles_post_ra>
// kernel: tpu_custom_call.1
= control target key start
LH: loop header
LB: loop body
LE: loop exit
PB: predicated region body
PF: predicated region fallthrough
CT: control target
= control target key end

     0   :  { %s3443_s0 = inlined_call_operand.hbm [shape: bf16[4,128,128], index: 0, kind: input, shape index: {}]   ;;  %s3444_s1 = inlined_call_operand.hbm [shape: bf16[4,128,128], index: 1, kind: input, shape index: {}]   ;;  %s3445_s2 = inlined_call_operand.hbm [shape: bf16[8,128,128], index: 2, kind: input, shape index: {}]   ;;  %s3446_s3 = inlined_call_operand.hbm [shape: f32[16,128], index: 3, kind: input, shape index: {}]   ;;  %s3447_s4 = inlined_call_operand.hbm [shape: f32[4,128,128], index: 4, kind: output, shape index: {}]  }
   0x1   :  { %3452 = sst [smem:[#allocation16_spill]] %s3443_s0 }
   0x2   :  { %3453 = sst [smem:[#allocation17_spill]] %s3445_s2 }
   0x3   :  { %3454 = sst [smem:[#allocation18_spill]] %s3446_s3 }
   0x4   :  { %9 = vsyncpa [#allocation3], 0 }
   0x5   :  { %11 = vsyncpa [#allocation3 + $0x1], 0 }
   0x6   :  { %12 = vsyncpa [#allocation6], 0 }
   0x7   :  { %14 = vsyncpa [#allocation6 + $0x1], 0 }
   0x8   :  { %15 = vsyncpa [#allocation9], 0 }
   0x9   :  { %16 = vsyncpa [#allocation4], 0 }
   0xa   :  { %18 = vsyncpa [#allocation4 + $0x1], 0  ;;  %s2940_s15 = smov 0   ;;  %s2942_s16 = smov 0  }
   0xb   :  { %s2944_s17 = smov 0   ;;  %s2946_s18 = smov 0  }
   0xc LB: > { %s2961_s19 = sadd.s32 4294967295, %s2905_s18   ;;  %s2102_s20 = sadd.s32 4294967294, %s2905_s18   ;;  %s2905_s18 = sphi %s2946_s18, %s3468_s18   ;;  %s2901_s17 = sphi %s2944_s17, %s3467_s17   ;;  %s2897_s16 = sphi %s2942_s16, %s3466_s16   ;;  %s2893_s15 = sphi %s2940_s15, %s3465_s15  }
   0xd   : > { %p44_p0 = scmp.ne.s32.totalorder %s2897_s16, %s2893_s15  ;;  %p45_p1 = scmp.eq.s32.totalorder %s2961_s19, 0 }
   0xe   : > { %p136_p2 = scmp.eq.s32.totalorder %s2961_s19, 3  ;;  %p142_p3 = scmp.eq.s32.totalorder %s2102_s20, 3 }
   0xf   : > { %p2970_p4 = por %p45_p1, %p44_p0  ;;  %p2103_p5 = scmp.ge.s32.totalorder %s2905_s18, 1 }
  0x10   : > { %p2975_p6 = por %p142_p3, %p44_p0  ;;  %p149_p7 = scmp.lt.s32.totalorder %s2905_s18, 5 }
  0x11   : > { %s3457_s2 = sld [smem:[#allocation17_spill]]  ;;  %s2907_s27 = smov [#allocation7]  }
  0x12   : > { %p2983_p8 = pnand %p2103_p5, %p149_p7  ;;  %s162_s28 = sshll.u32 %s2907_s27, 4  ;;  %s163_s28 = int_to_ptr.vmem [resolvable:$true] %s162_s28 }
  0x13   : > { %s3459_s3 = sld [smem:[#allocation18_spill]]  ;;  %s3448_s6 = smov 64  }
  0x14   : > { %p2565_p9 = pneg %p2983_p8  ;;  %s3450_s7 = smov 4  }
  0x15   : > { %s2910_s8 = smov [#allocation8]   ;;  %s2911_s10 = smov 128  }
  0x16   : > { %p2566_p10 = pnand %p2565_p9, %p45_p1  ;;  %s176_s9 = sshll.u32 %s2910_s8, 4  ;;  %s177_s9 = int_to_ptr.vmem [resolvable:$true] %s176_s9 }
  0x17   : > { %s160_s25 = sshll.u32 %s3457_s2, 4  ;;  %s2912_s11 = smov 8   ;;  %s161_s25 = int_to_ptr.hbm [resolvable:$true] %s160_s25 }
  0x18   : > { %2568 = dma.hbm_to_vmem [thread:$0]  (!%p2566_p10), %s161_s25, 8192, %s163_s28, [#allocation6], %s3448_s6, %s3448_s6, %s3450_s7  }
  0x19   : > { %s174_s5 = sshll.u32 %s3459_s3, 4  ;;  %s2998_s12 = sadd.s32 1, %s2905_s18   ;;  %s175_s5 = int_to_ptr.hbm [resolvable:$true] %s174_s5 }
  0x1a   : > { %2571 = dma.hbm_to_vmem [thread:$0]  (!%p2566_p10), %s175_s5, 256, %s177_s9, [#allocation9], %s2911_s10, %s2911_s10, %s2912_s11  }
  0x1b   : > { %s28_s13 = ssub.s32 %s2905_s18, %s2998_s12  ;;  %s31_s14 = sadd.s32 1, %s2901_s17 }
  0x1c   : > { %p29_p11 = scmp.eq.s32.totalorder %s28_s13, 0  ;;  %p38_p12 = scmp.ne.s32.totalorder %s2901_s17, %s2897_s16 }
  0x1d   : > { %p39_p13 = scmp.eq.s32.totalorder %s2905_s18, 0  ;;  %p2585_p5 = scmp.lt.s32.totalorder %s2905_s18, 4 }
  0x1e   : > { %s3007_s20 = scalar_select %p29_p11, %s2901_s17, %s31_s14  }
  0x1f   : > { %p40_p0 = por %p39_p13, %p38_p12  ;;  %p3011_p3 = por %p136_p2, %p38_p12 }
  0x20   : > { %s190_s24 = sand.u32 1, %s2901_s17   ;;  %s2444_s27 = sshll.u32 %s2905_s18, 6 }
  0x21   : > { %s3017_s25 = sshll.u32 %s190_s24, 6  ;;  %s3461_s0 = sld [smem:[#allocation16_spill]] }
  0x22   : > { %s194_s5 = scalar_lea.vmem [#allocation2], %s3017_s25  ;;  %p3024_p7 = pnand %p2585_p5, %p40_p0 }
  0x23   : > { %s202_s8 = sshll.u32 %s194_s5, 4  ;;  %s221_s14 = scalar_lea.hbm %s3444_s1, %s2444_s27  ;;  %s203_s8 = int_to_ptr.vmem [resolvable:$true] %s202_s8 }
  0x24   : > { %s222_s6 = sshll.u32 %s221_s14, 4  ;;  %s191_s7 = scalar_lea.sflag [#allocation3], %s190_s24  ;;  %s223_s6 = int_to_ptr.hbm [resolvable:$true] %s222_s6 }
  0x25   : > { %p2771_p9 = pneg %p3024_p7 }
  0x27   : > { %s199_s30 = scalar_lea.hbm %s3461_s0, %s2444_s27  ;;  %s2774_s5 = scalar_lea.hbm %s3461_s0, 256 }
  0x28   : > { %s200_s9 = sshll.u32 %s199_s30, 4  ;;  %s201_s9 = int_to_ptr.hbm [resolvable:$true] %s200_s9 }
  0x29   : > { %s2767_s2 = sshra.s32 %s201_s9, 4  ;;  %s2768_s2 = int_to_ptr.hbm [resolvable:$true] %s2767_s2 }
  0x2a   : > { %s2769_s28 = scalar_lea.hbm %s2768_s2, 64  ;;  %p2775_p12 = scmp.lt.s32.totalorder %s2768_s2, %s3461_s0 }
  0x2b   : > { %p2770_p2 = scmp.ne.s32.totalorder %s2768_s2, %s2769_s28  ;;  %p2776_p13 = scmp.lt.s32.totalorder %s2774_s5, %s2769_s28 }
  0x2d   : > { %p2772_p10 = pnand %p2771_p9, %p2770_p2  ;;  %p2777_p0 = por %p2776_p13, %p2775_p12 }
  0x2f   : > { %p2773_p11 = pneg %p2772_p10 }
  0x31   : > { %p2778_p5 = pnand %p2777_p0, %p2773_p11 }
  0x33   : > { %2781 = shalt.err (!%p2778_p5)
}
  0x34   : > { %s3463_s24 = smov 4   ;;  %s3464_s27 = smov 64  }
  0x35   : > { %2575 = dma.hbm_to_vmem [thread:$0]  (!%p3024_p7), %s201_s9, 1024, %s203_s8, %s191_s7, %s3464_s27, %s3464_s27, %s3463_s24  }
  0x36   : > { %s216_s14 = scalar_lea.vmem [#allocation5], %s3017_s25  ;;  %s212_s30 = sand.u32 1, %s2905_s18  }
  0x37   : > { %s224_s29 = sshll.u32 %s216_s14, 4  ;;  %s213_s11 = scalar_lea.sflag [#allocation6], %s212_s30  ;;  %s225_s29 = int_to_ptr.vmem [resolvable:$true] %s224_s29 }
  0x38   : > { %s2797_s2 = sshra.s32 %s223_s6, 4  ;;  %s2804_s0 = scalar_lea.hbm %s3444_s1, 256  ;;  %s2798_s2 = int_to_ptr.hbm [resolvable:$true] %s2797_s2 }
  0x39   : > { %s2799_s28 = scalar_lea.hbm %s2798_s2, 64  ;;  %p2805_p12 = scmp.lt.s32.totalorder %s2798_s2, %s3444_s1 }
  0x3a   : > { %p2800_p2 = scmp.ne.s32.totalorder %s2798_s2, %s2799_s28  ;;  %p2806_p13 = scmp.lt.s32.totalorder %s2804_s0, %s2799_s28 }
  0x3c   : > { %p2802_p10 = pnand %p2800_p2, %p2771_p9  ;;  %p2807_p0 = por %p2806_p13, %p2805_p12 }
  0x3e   : > { %p2803_p11 = pneg %p2802_p10 }
  0x40   : > { %p2808_p5 = pnand %p2807_p0, %p2803_p11 }
  0x42   : > { %2811 = shalt.err (!%p2808_p5)
}
  0x43   : > { %2578 = dma.hbm_to_vmem [thread:$0]  (!%p3024_p7), %s223_s6, 1024, %s225_s29, %s213_s11, %s3464_s27, %s3464_s27, %s3463_s24  }
  0x44   : > { %236 = sbr.rel (%p2983_p8) target bundleno = 2309 (0x905), region = 36  ;;  %s3066_s25 = sand.u32 (!%p2983_p8), 1, %s2897_s16  }
  0x45   : > { %s2114_s3 = sshll.u32 (!%p2983_p8), %s3066_s25, 6  ;;  %s239_s0 = scalar_lea.sflag (!%p2983_p8), [#allocation3], %s3066_s25 }
  0x46   : > { %s3070_s8 = scalar_lea.vmem (!%p2983_p8), [#allocation2], %s2114_s3 }
  0x49   : > { %2872 = dma.done.wait (%p2970_p4), %s239_s0, 1024  }
  0x4a   : > { %2874 = vsyncadd (%p2970_p4), %s239_s0, 4294966272  ;;  %s248_s6 = sand.u32 1, %s2961_s19   ;;  %s252_s9 = scalar_lea.vmem [#allocation5], %s2114_s3 }
  0x4b   : > { %s249_s26 = scalar_lea.sflag [#allocation6], %s248_s6 }
  0x4c   : > { %2876 = dma.done.wait (%p2970_p4), %s249_s26, 1024  }
  0x4d   : > { %2878 = vsyncadd (%p2970_p4), %s249_s26, 4294966272 }
  0x4e   : > { %2880 = dma.done.wait (%p45_p1), [#allocation6], 8192  }
  0x4f   : > { %2882 = vsyncadd (%p45_p1), [#allocation6], 4294959104 }
  0x50   : > { %2884 = dma.done.wait (%p45_p1), [#allocation9], 256  }
  0x51   : > { %2886 = vsyncadd (%p45_p1), [#allocation9], 4294967040  ;;  %v2461_v0 = vld [vmem:[%s252_s9 + $0x38] sm:$0xff]  ;;  %v2460_v1 = vld [vmem:[%s252_s9 + $0x30] sm:$0xff]  ;;  %s2118_s21 = sshll.u32 %s3066_s25, 7  ;;  %s2526_s24 = sshll.u32 %s2961_s19, 7 }
  0x52   : > { %2527 = vmatpush.bf16.msra.mxu3 %v2461_v0  ;;  %421 = vmatpush.bf16.msra.mxu0 %v2461_v0  ;;  %v2459_v2 = vld [vmem:[%s252_s9 + $0x28] sm:$0xff]  ;;  %v2458_v3 = vld [vmem:[%s252_s9 + $0x20] sm:$0xff]  ;;  %v2457_v4 = vld [vmem:[%s252_s9 + $0x18] sm:$0xff]  ;;  %s3377_s10 = scalar_lea.vmem [#allocation10], %s2118_s21  ;;  %s1983_s29 = scalar_lea.hbm %s3447_s4, %s2526_s24 }
  0x53   : > { %v2456_v5 = vld [vmem:[%s252_s9 + $0x10] sm:$0xff]  ;;  %v2455_v6 = vld [vmem:[%s252_s9 + $0x8] sm:$0xff]  ;;  %v2454_v7 = vld [vmem:[%s252_s9] sm:$0xff]  ;;  %s1984_s30 = sshll.u32 %s3377_s10, 4  ;;  %s1986_s11 = sshll.u32 %s1983_s29, 4  ;;  %s1985_s30 = int_to_ptr.vmem [resolvable:$true] %s1984_s30  ;;  %s1987_s11 = int_to_ptr.hbm [resolvable:$true] %s1986_s11 }
  0x54   : > { %v3090_v8 = vld [vmem:[%s3070_s8 + $0x10] sm:$0xff]  ;;  %v3094_v9 = vld [vmem:[%s3070_s8 + $0x18] sm:$0xff]  ;;  %v3098_v10 = vld [vmem:[%s3070_s8 + $0x20] sm:$0xff]  ;;  %s1972_s2 = scalar_lea.sflag [#allocation4], %s3066_s25  ;;  %s2841_s19 = sshra.s32 %s1987_s11, 4  ;;  %s2842_s19 = int_to_ptr.hbm [resolvable:$true] %s2841_s19 }
  0x55   : > { %v3102_v11 = vld [vmem:[%s3070_s8] sm:$0xff]  ;;  %v3106_v12 = vld [vmem:[%s3070_s8 + $0x28] sm:$0xff]  ;;  %v2469_v14 = vld [vmem:[#allocation7 + $0x38] sm:$0xff]  ;;  %s2843_s28 = scalar_lea.hbm %s2842_s19, 128  ;;  %s2847_s7 = scalar_lea.hbm %s3447_s4, 512 }
  0x56   : > { %2528 = vmatpush.bf16.msra.mxu3 %v2460_v1  ;;  %422 = vmatpush.bf16.msra.mxu0 %v2460_v1  ;;  %v3110_v13 = vld [vmem:[%s3070_s8 + $0x8] sm:$0xff]  ;;  %v2468_v15 = vld [vmem:[#allocation7 + $0x30] sm:$0xff]  ;;  %v2466_v17 = vld [vmem:[#allocation7 + $0x20] sm:$0xff]  ;;  %p2844_p1 = scmp.ne.s32.totalorder %s2842_s19, %s2843_s28  ;;  %p2848_p7 = scmp.lt.s32.totalorder %s2842_s19, %s3447_s4 }
  0x57   : > { %2535 = vmatpush.bf16.msra.mxu1 %v2469_v14  ;;  %v2467_v16 = vld [vmem:[#allocation7 + $0x28] sm:$0xff]  ;;  %v3114_v18 = vld [vmem:[%s3070_s8 + $0x30] sm:$0xff]  ;;  %v2465_v19 = vld [vmem:[#allocation7 + $0x18] sm:$0xff]  ;;  %p2849_p9 = scmp.lt.s32.totalorder %s2847_s7, %s2843_s28 }
  0x58   : > { %v3118_v20 = vld [vmem:[%s3070_s8 + $0x38] sm:$0xff]  ;;  %v2464_v21 = vld [vmem:[#allocation7 + $0x10] sm:$0xff]  ;;  %v2463_v22 = vld [vmem:[#allocation7 + $0x8] sm:$0xff]  ;;  %p2845_p4 = pnand %p2844_p1, %p3011_p3 }
  0x59   : > { %v2462_v23 = vld [vmem:[#allocation7] sm:$0xff]  ;;  %v2477_v41 = vld [vmem:[#allocation7 + $0x78] sm:$0xff]  ;;  %v2476_v43 = vld [vmem:[#allocation7 + $0x70] sm:$0xff]  ;;  %p2850_p2 = por %p2849_p9, %p2848_p7 }
  0x5a   : > { %2529 = vmatpush.bf16.msra.mxu3 %v2459_v2  ;;  %423 = vmatpush.bf16.msra.mxu0 %v2459_v2  ;;  %v2475_v45 = vld [vmem:[#allocation7 + $0x68] sm:$0xff]  ;;  %v2474_v46 = vld [vmem:[#allocation7 + $0x60] sm:$0xff]  ;;  %v2473_v52 = vld [vmem:[#allocation7 + $0x58] sm:$0xff]  ;;  %p2846_p8 = pneg %p2845_p4 }
  0x5b   : > { %2536 = vmatpush.bf16.msra.mxu1 %v2468_v15  ;;  %2543 = vmatpush.bf16.msra.mxu2 %v2477_v41  ;;  %v2472_v53 = vld [vmem:[#allocation7 + $0x50] sm:$0xff]  ;;  %v2471_v54 = vld [vmem:[#allocation7 + $0x48] sm:$0xff]  ;;  %v2470_v55 = vld [vmem:[#allocation7 + $0x40] sm:$0xff] }
  0x5c   : > { %v2629_v57 = vld [vmem:[#allocation8] ss:$0 sm:$0xff]  ;;  %p2851_p10 = pnand %p2850_p2, %p2846_p8 }
  0x5e   : > { %2530 = vmatpush.bf16.msra.mxu3 %v2458_v3  ;;  %424 = vmatpush.bf16.msra.mxu0 %v2458_v3 }
  0x5f   : > { %2537 = vmatpush.bf16.msra.mxu1 %v2467_v16  ;;  %2544 = vmatpush.bf16.msra.mxu2 %v2476_v43 }
  0x62   : > { %2531 = vmatpush.bf16.msra.mxu3 %v2457_v4  ;;  %425 = vmatpush.bf16.msra.mxu0 %v2457_v4 }
  0x63   : > { %2538 = vmatpush.bf16.msra.mxu1 %v2466_v17  ;;  %2545 = vmatpush.bf16.msra.mxu2 %v2475_v45 }
  0x66   : > { %2532 = vmatpush.bf16.msra.mxu3 %v2456_v5  ;;  %426 = vmatpush.bf16.msra.mxu0 %v2456_v5 }
  0x67   : > { %2539 = vmatpush.bf16.msra.mxu1 %v2465_v19  ;;  %2546 = vmatpush.bf16.msra.mxu2 %v2474_v46 }
  0x6a   : > { %2533 = vmatpush.bf16.msra.mxu3 %v2455_v6  ;;  %427 = vmatpush.bf16.msra.mxu0 %v2455_v6 }
  0x6b   : > { %2540 = vmatpush.bf16.msra.mxu1 %v2464_v21  ;;  %2547 = vmatpush.bf16.msra.mxu2 %v2473_v52 }
  0x6e   : > { %2534 = vmatpush.bf16.msra.mxu3 %v2454_v7  ;;  %428 = vmatpush.bf16.msra.mxu0 %v2454_v7 }
  0x6f   : > { %2541 = vmatpush.bf16.msra.mxu1 %v2463_v22  ;;  %2548 = vmatpush.bf16.msra.mxu2 %v2472_v53 }
  0x71   : > { %439 = vmatmul.bf16.vlgmr.msra.gmra.mxu3 %v3090_v8  ;;  %429 = vmatmul.bf16.vlgmr.msra.gmra.mxu0 %v3102_v11 }
  0x72   : > { %544 = vmatpush.bf16.msrb.mxu0 %v2469_v14 }
  0x73   : > { %2542 = vmatpush.bf16.msra.mxu1 %v2462_v23  ;;  %2549 = vmatpush.bf16.msra.mxu2 %v2471_v54 }
  0x76   : > { %545 = vmatpush.bf16.msrb.mxu0 %v2468_v15 }
  0x77   : > { %2550 = vmatpush.bf16.msra.mxu2 %v2470_v55 }
  0x7a   : > { %546 = vmatpush.bf16.msrb.mxu0 %v2467_v16 }
  0x7e   : > { %547 = vmatpush.bf16.msrb.mxu0 %v2466_v17 }
  0x81   : > { %444 = vmatmul.bf16.gmra.mxu3 %v3094_v9  ;;  %434 = vmatmul.bf16.gmra.mxu0 %v3110_v13 }
  0x82   : > { %548 = vmatpush.bf16.msrb.mxu0 %v2465_v19 }
  0x86   : > { %549 = vmatpush.bf16.msrb.mxu0 %v2464_v21 }
  0x8a   : > { %550 = vmatpush.bf16.msrb.mxu0 %v2463_v22 }
  0x8e   : > { %551 = vmatpush.bf16.msrb.mxu0 %v2462_v23 }
  0x91   : > { %449 = vmatmul.bf16.gmra.mxu3 %v3098_v10 }
  0x92   : > { %684 = vmatpush.bf16.msra.mxu0 %v2477_v41 }
  0x96   : > { %685 = vmatpush.bf16.msra.mxu0 %v2476_v43 }
  0x9a   : > { %686 = vmatpush.bf16.msra.mxu0 %v2475_v45 }
  0x9e   : > { %687 = vmatpush.bf16.msra.mxu0 %v2474_v46 }
  0xa1   : > { %454 = vmatmul.bf16.gmra.mxu3 %v3106_v12 }
  0xa2   : > { %688 = vmatpush.bf16.msra.mxu0 %v2473_v52 }
  0xa6   : > { %689 = vmatpush.bf16.msra.mxu0 %v2472_v53 }
  0xaa   : > { %690 = vmatpush.bf16.msra.mxu0 %v2471_v54 }
  0xae   : > { %691 = vmatpush.bf16.msra.mxu0 %v2470_v55 }
  0xb1   : > { %459 = vmatmul.bf16.gmra.mxu3 %v3114_v18 }
  0xc1   : > { %464 = vmatmul.bf16.gmra.mxu3 %v3118_v20 }
  0xee   : > { %v430_v31 = vpop.f32.mrf.mxu0 }
  0xf4   : > { %v440_v24 = vpop.f32.mrf.mxu3 }
  0xf6   : > { %v432_v34 = vpop.f32.mrf.mxu0 }
  0xf7   : > { %v470_v35 = vpack.c.bf16 %v432_v34, %v430_v31 }
  0xf9   : > { %552 = vmatmul.bf16.vlgmr.msrb.gmra.mxu0 %v470_v35 }
  0xfc   : > { %v442_v25 = vpop.f32.mrf.mxu3 }
  0xfd   : > { %v472_v26 = vpack.c.bf16 %v442_v25, %v440_v24 }
  0xfe   : > { %v435_v37 = vpop.f32.mrf.mxu0 }
  0xff   : > { %562 = vmatmul.bf16.vlgmr.msra.gmra.mxu1 %v472_v26 }
 0x104   : > { %v445_v27 = vpop.f32.mrf.mxu3 }
 0x106   : > { %v437_v40 = vpop.f32.mrf.mxu0 }
 0x107   : > { %v471_v42 = vpack.c.bf16 %v437_v40, %v435_v37 }
 0x109   : > { %557 = vmatmul.bf16.gmra.mxu0 %v471_v42 }
 0x10c   : > { %v447_v28 = vpop.f32.mrf.mxu3 }
 0x10d   : > { %v473_v29 = vpack.c.bf16 %v447_v28, %v445_v27 }
 0x10f   : > { %567 = vmatmul.bf16.gmra.mxu1 %v473_v29 }
 0x114   : > { %v450_v30 = vpop.f32.mrf.mxu3 }
 0x11c   : > { %v452_v32 = vpop.f32.mrf.mxu3 }
 0x11d   : > { %v474_v33 = vpack.c.bf16 %v452_v32, %v450_v30 }
 0x11f   : > { %572 = vmatmul.bf16.gmra.mxu1 %v474_v33 }
 0x124   : > { %v455_v36 = vpop.f32.mrf.mxu3 }
 0x12c   : > { %v457_v38 = vpop.f32.mrf.mxu3 }
 0x12d   : > { %v475_v39 = vpack.c.bf16 %v457_v38, %v455_v36 }
 0x12f   : > { %577 = vmatmul.bf16.gmra.mxu1 %v475_v39 }
 0x134   : > { %v460_v44 = vpop.f32.mrf.mxu3 }
 0x13c   : > { %v462_v47 = vpop.f32.mrf.mxu3 }
 0x13d   : > { %v476_v48 = vpack.c.bf16 %v462_v47, %v460_v44 }
 0x13f   : > { %582 = vmatmul.bf16.gmra.mxu1 %v476_v48 }
 0x144   : > { %v465_v49 = vpop.f32.mrf.mxu3 }
 0x14c   : > { %v467_v50 = vpop.f32.mrf.mxu3 }
 0x14d   : > { %v477_v51 = vpack.c.bf16 %v467_v50, %v465_v49 }
 0x14f   : > { %587 = vmatmul.bf16.gmra.mxu1 %v477_v51 }
 0x176   : > { %v553_v14 = vpop.f32.mrf.mxu0 }
 0x177   : > { %v554_v17 = vadd.f32 %v2629_v57, %v553_v14 }
 0x179   : > { %v593_v24 = vmax.f32 %v554_v17, 0.0 }
 0x17c   : > { %v563_v56 = vpop.f32.mrf.mxu1 }
 0x17d   : > { %v564_v58 = vadd.f32 %v2629_v57, %v563_v56 }
 0x17e   : > { %v555_v23 = vpop.f32.mrf.mxu0 }
 0x17f   : > { %v597_v61 = vmax.f32 %v564_v58, 0.0  ;;  %v556_v25 = vadd.f32 %v2629_v57, %v555_v23 }
 0x181   : > { %v594_v27 = vmax.f32 %v556_v25, 0.0 }
 0x183   : > { %v609_v29 = vpack.c.bf16 %v594_v27, %v593_v24 }
 0x184   : > { %v565_v59 = vpop.f32.mrf.mxu1 }
 0x185   : > { %v566_v60 = vadd.f32 %v2629_v57, %v565_v59  ;;  %692 = vmatmul.bf16.vlgmr.msra.gmra.mxu0 %v609_v29 }
 0x186   : > { %v558_v30 = vpop.f32.mrf.mxu0 }
 0x187   : > { %v598_v62 = vmax.f32 %v566_v60, 0.0  ;;  %v559_v33 = vadd.f32 %v2629_v57, %v558_v30 }
 0x189   : > { %v611_v63 = vpack.c.bf16 %v598_v62, %v597_v61  ;;  %v595_v38 = vmax.f32 %v559_v33, 0.0  ;;  %v3126_v33 = vld [vmem:[#allocation8 + $0x3] ss:$0 sm:$0xff] }
 0x18b   : > { %702 = vmatmul.bf16.vlgmr.msra.gmra.mxu2 %v611_v63 }
 0x18c   : > { %v568_v0 = vpop.f32.mrf.mxu1 }
 0x18d   : > { %v569_v1 = vadd.f32 %v2629_v57, %v568_v0 }
 0x18e   : > { %v560_v37 = vpop.f32.mrf.mxu0 }
 0x18f   : > { %v599_v4 = vmax.f32 %v569_v1, 0.0  ;;  %v561_v39 = vadd.f32 %v2629_v57, %v560_v37 }
 0x191   : > { %v596_v41 = vmax.f32 %v561_v39, 0.0 }
 0x193   : > { %v610_v43 = vpack.c.bf16 %v596_v41, %v595_v38 }
 0x194   : > { %v570_v2 = vpop.f32.mrf.mxu1 }
 0x195   : > { %v571_v3 = vadd.f32 %v2629_v57, %v570_v2  ;;  %697 = vmatmul.bf16.gmra.mxu0 %v610_v43 }
 0x197   : > { %v600_v5 = vmax.f32 %v571_v3, 0.0 }
 0x199   : > { %v612_v6 = vpack.c.bf16 %v600_v5, %v599_v4 }
 0x19b   : > { %707 = vmatmul.bf16.gmra.mxu2 %v612_v6  ;;  %v2630_v6 = vld [vmem:[#allocation8 + $0x1] ss:$0 sm:$0xff] }
 0x19c   : > { %v573_v7 = vpop.f32.mrf.mxu1 }
 0x19d   : > { %v574_v15 = vadd.f32 %v2629_v57, %v573_v7 }
 0x19f   : > { %v601_v21 = vmax.f32 %v574_v15, 0.0 }
 0x1a4   : > { %v575_v16 = vpop.f32.mrf.mxu1 }
 0x1a5   : > { %v576_v19 = vadd.f32 %v2629_v57, %v575_v16 }
 0x1a7   : > { %v602_v22 = vmax.f32 %v576_v19, 0.0  ;;  %v3121_v19 = vld [vmem:[#allocation8 + $0x2] ss:$0 sm:$0xff] }
 0x1a9   : > { %v613_v26 = vpack.c.bf16 %v602_v22, %v601_v21 }
 0x1ab   : > { %712 = vmatmul.bf16.gmra.mxu2 %v613_v26 }
 0x1ac   : > { %v578_v28 = vpop.f32.mrf.mxu1 }
 0x1ad   : > { %v579_v31 = vadd.f32 %v2629_v57, %v578_v28 }
 0x1af   : > { %v603_v35 = vmax.f32 %v579_v31, 0.0 }
 0x1b4   : > { %v580_v32 = vpop.f32.mrf.mxu1 }
 0x1b5   : > { %v581_v34 = vadd.f32 %v2629_v57, %v580_v32 }
 0x1b7   : > { %v604_v36 = vmax.f32 %v581_v34, 0.0 }
 0x1b9   : > { %v614_v40 = vpack.c.bf16 %v604_v36, %v603_v35 }
 0x1bb   : > { %717 = vmatmul.bf16.gmra.mxu2 %v614_v40 }
 0x1bc   : > { %v583_v42 = vpop.f32.mrf.mxu1 }
 0x1bd   : > { %v584_v44 = vadd.f32 %v2629_v57, %v583_v42 }
 0x1bf   : > { %v605_v47 = vmax.f32 %v584_v44, 0.0 }
 0x1c4   : > { %v585_v45 = vpop.f32.mrf.mxu1 }
 0x1c5   : > { %v586_v46 = vadd.f32 %v2629_v57, %v585_v45 }
 0x1c7   : > { %v606_v48 = vmax.f32 %v586_v46, 0.0 }
 0x1c9   : > { %v615_v49 = vpack.c.bf16 %v606_v48, %v605_v47 }
 0x1cb   : > { %722 = vmatmul.bf16.gmra.mxu2 %v615_v49 }
 0x1cc   : > { %v588_v50 = vpop.f32.mrf.mxu1 }
 0x1cd   : > { %v589_v51 = vadd.f32 %v2629_v57, %v588_v50 }
 0x1cf   : > { %v607_v54 = vmax.f32 %v589_v51, 0.0 }
 0x1d4   : > { %v590_v52 = vpop.f32.mrf.mxu1 }
 0x1d5   : > { %v591_v53 = vadd.f32 %v2629_v57, %v590_v52 }
 0x1d7   : > { %v608_v55 = vmax.f32 %v591_v53, 0.0 }
 0x1d9   : > { %v616_v56 = vpack.c.bf16 %v608_v55, %v607_v54 }
 0x1db   : > { %727 = vmatmul.bf16.gmra.mxu2 %v616_v56 }
 0x202   : > { %v693_v3 = vpop.f32.mrf.mxu0 }
 0x20a   : > { %v695_v7 = vpop.f32.mrf.mxu0 }
 0x20e   : > { %v703_v58 = vpop.f32.mrf.mxu2 }
 0x20f   : > { %v704_v53 = vadd.f32 %v2630_v6, %v703_v58 }
 0x212   : > { %v698_v28 = vpop.f32.mrf.mxu0 }
 0x216   : > { %v705_v59 = vpop.f32.mrf.mxu2 }
 0x217   : > { %v706_v48 = vadd.f32 %v2630_v6, %v705_v59 }
 0x21a   : > { %v700_v54 = vpop.f32.mrf.mxu0 }
 0x21e   : > { %v708_v60 = vpop.f32.mrf.mxu2 }
 0x21f   : > { %v709_v44 = vadd.f32 %v2630_v6, %v708_v60 }
 0x221   : > { %v739_v55 = vmax.f32 %v709_v44, 0.0 }
 0x226   : > { %v710_v61 = vpop.f32.mrf.mxu2 }
 0x227   : > { %v711_v39 = vadd.f32 %v2630_v6, %v710_v61  ;;  %v738_v61 = vmax.f32 %v706_v48, 0.0 }
 0x229   : > { %v740_v49 = vmax.f32 %v711_v39, 0.0  ;;  %v2482_v39 = vld [vmem:[#allocation7 + $0xa0] sm:$0xff] }
 0x22e   : > { %v713_v62 = vpop.f32.mrf.mxu2 }
 0x22f   : > { %v714_v34 = vadd.f32 %v2630_v6, %v713_v62  ;;  %v758_v62 = vmul.f32 %v3121_v19, %v740_v49 }
 0x231   : > { %v741_v45 = vmax.f32 %v714_v34, 0.0 }
 0x233   : > { %v759_v56 = vmul.f32 %v3121_v19, %v741_v45 }
 0x235   : > { %v777_v58 = vadd.f32 %v3126_v33, %v759_v56 }
 0x236   : > { %v715_v63 = vpop.f32.mrf.mxu2 }
 0x237   : > { %v716_v29 = vadd.f32 %v2630_v6, %v715_v63  ;;  %v699_v63 = vadd.f32 %v2630_v6, %v698_v28 }
 0x239   : > { %v742_v40 = vmax.f32 %v716_v29, 0.0 }
 0x23b   : > { %v760_v50 = vmul.f32 %v3121_v19, %v742_v40  ;;  %v2481_v40 = vld [vmem:[#allocation7 + $0x98] sm:$0xff] }
 0x23e   : > { %v718_v0 = vpop.f32.mrf.mxu2 }
 0x23f   : > { %v719_v24 = vadd.f32 %v2630_v6, %v718_v0  ;;  %v701_v0 = vadd.f32 %v2630_v6, %v700_v54 }
 0x241   : > { %v743_v35 = vmax.f32 %v719_v24, 0.0 }
 0x243   : > { %v761_v46 = vmul.f32 %v3121_v19, %v743_v35 }
 0x245   : > { %v779_v60 = vadd.f32 %v3126_v33, %v761_v46 }
 0x246   : > { %v720_v1 = vpop.f32.mrf.mxu2 }
 0x247   : > { %v721_v21 = vadd.f32 %v2630_v6, %v720_v1  ;;  %v778_v1 = vadd.f32 %v3126_v33, %v760_v50 }
 0x249   : > { %v744_v30 = vmax.f32 %v721_v21, 0.0  ;;  %v789_v21 = vpack.c.bf16 %v778_v1, %v777_v58  ;;  %v2492_v1 = vld [vmem:[#allocation7 + $0xf0] sm:$0xff]  ;;  %v2490_v58 = vld [vmem:[#allocation7 + $0xe0] sm:$0xff] }
 0x24b   : > { %v762_v41 = vmul.f32 %v3121_v19, %v744_v30 }
 0x24d   : > { %v780_v52 = vadd.f32 %v3126_v33, %v762_v41  ;;  %v2480_v41 = vld [vmem:[#allocation7 + $0x90] sm:$0xff] }
 0x24e   : > { %v723_v2 = vpop.f32.mrf.mxu2 }
 0x24f   : > { %v724_v15 = vadd.f32 %v2630_v6, %v723_v2  ;;  %v790_v59 = vpack.c.bf16 %v780_v52, %v779_v60  ;;  %v737_v2 = vmax.f32 %v704_v53, 0.0 }
 0x251   : > { %v745_v25 = vmax.f32 %v724_v15, 0.0  ;;  %v696_v15 = vadd.f32 %v2630_v6, %v695_v7 }
 0x253   : > { %v763_v36 = vmul.f32 %v3121_v19, %v745_v25 }
 0x255   : > { %v781_v47 = vadd.f32 %v3126_v33, %v763_v36 }
 0x256   : > { %v725_v4 = vpop.f32.mrf.mxu2 }
 0x257   : > { %v726_v57 = vadd.f32 %v2630_v6, %v725_v4  ;;  %v757_v4 = vmul.f32 %v3121_v19, %v739_v55 }
 0x259   : > { %v746_v22 = vmax.f32 %v726_v57, 0.0  ;;  %v776_v57 = vadd.f32 %v3126_v33, %v758_v62 }
 0x25b   : > { %v764_v31 = vmul.f32 %v3121_v19, %v746_v22  ;;  %v755_v22 = vmul.f32 %v3121_v19, %v737_v2  ;;  %v2491_v2 = vld [vmem:[#allocation7 + $0xe8] sm:$0xff] }
 0x25d   : > { %v782_v43 = vadd.f32 %v3126_v33, %v764_v31  ;;  %v773_v29 = vadd.f32 %v3126_v33, %v755_v22 }
 0x25e   : > { %v728_v5 = vpop.f32.mrf.mxu2 }
 0x25f   : > { %v729_v14 = vadd.f32 %v2630_v6, %v728_v5  ;;  %v791_v51 = vpack.c.bf16 %v782_v43, %v781_v47  ;;  %v756_v5 = vmul.f32 %v3121_v19, %v738_v61  ;;  %v2478_v43 = vld [vmem:[#allocation7 + $0x80] sm:$0xff] }
 0x261   : > { %v747_v16 = vmax.f32 %v729_v14, 0.0  ;;  %v694_v14 = vadd.f32 %v2630_v6, %v693_v3  ;;  %v774_v25 = vadd.f32 %v3126_v33, %v756_v5  ;;  %v2489_v5 = vld [vmem:[#allocation7 + $0xd8] sm:$0xff] }
 0x263   : > { %v765_v26 = vmul.f32 %v3121_v19, %v747_v16  ;;  %v735_v16 = vmax.f32 %v699_v63, 0.0  ;;  %v733_v24 = vmax.f32 %v694_v14, 0.0  ;;  %v2493_v63 = vld [vmem:[#allocation7 + $0xf8] sm:$0xff] }
 0x264   : > { %1057 = vmatpush.bf16.msrb.mxu1 %v2493_v63 }
 0x265   : > { %v783_v37 = vadd.f32 %v3126_v33, %v765_v26  ;;  %v734_v26 = vmax.f32 %v696_v15, 0.0  ;;  %v751_v7 = vmul.f32 %v3121_v19, %v733_v24  ;;  %v2488_v15 = vld [vmem:[#allocation7 + $0xd0] sm:$0xff] }
 0x266   : > { %v730_v17 = vpop.f32.mrf.mxu2 }
 0x267   : > { %v731_v23 = vadd.f32 %v2630_v6, %v730_v17  ;;  %v736_v17 = vmax.f32 %v701_v0, 0.0  ;;  %v787_v6 = vpack.c.bf16 %v774_v25, %v773_v29  ;;  %v752_v30 = vmul.f32 %v3121_v19, %v734_v26  ;;  %v2633_v25 = vld [vmem:[#allocation8 + $0x4] ss:$0 sm:$0xff] }
 0x268   : > { %v769_v35 = vadd.f32 %v3126_v33, %v751_v7  ;;  %1058 = vmatpush.bf16.msrb.mxu1 %v2492_v1 }
 0x269   : > { %v748_v27 = vmax.f32 %v731_v23, 0.0  ;;  %v775_v23 = vadd.f32 %v3126_v33, %v757_v4  ;;  %v754_v28 = vmul.f32 %v3121_v19, %v736_v17  ;;  %v770_v36 = vadd.f32 %v3126_v33, %v752_v30 }
 0x26b   : > { %v766_v32 = vmul.f32 %v3121_v19, %v748_v27  ;;  %v753_v27 = vmul.f32 %v3121_v19, %v735_v16  ;;  %v788_v3 = vpack.c.bf16 %v776_v57, %v775_v23  ;;  %v2485_v19 = vld [vmem:[#allocation7 + $0xb8] sm:$0xff]  ;;  %v2487_v16 = vld [vmem:[#allocation7 + $0xc8] sm:$0xff] }
 0x26c   : > { %917 = vmatpush.bf16.msrb.mxu0 %v2485_v19  ;;  %1059 = vmatpush.bf16.msrb.mxu1 %v2491_v2 }
 0x26d   : > { %v784_v38 = vadd.f32 %v3126_v33, %v766_v32  ;;  %v771_v31 = vadd.f32 %v3126_v33, %v753_v27  ;;  %v772_v32 = vadd.f32 %v3126_v33, %v754_v28  ;;  %v2483_v33 = vld [vmem:[#allocation7 + $0xa8] sm:$0xff] }
 0x26f   : > { %v792_v42 = vpack.c.bf16 %v784_v38, %v783_v37  ;;  %v786_v34 = vpack.c.bf16 %v772_v32, %v771_v31  ;;  %v785_v37 = vpack.c.bf16 %v770_v36, %v769_v35  ;;  %v2484_v38 = vld [vmem:[#allocation7 + $0xb0] sm:$0xff] }
 0x270   : > { %918 = vmatpush.bf16.msrb.mxu0 %v2484_v38  ;;  %1060 = vmatpush.bf16.msrb.mxu1 %v2490_v58 }
 0x271   : > { %793 = vmatpush.bf16.msrb.mxu3 %v792_v42  ;;  %v2479_v42 = vld [vmem:[#allocation7 + $0x88] sm:$0xff] }
 0x274   : > { %919 = vmatpush.bf16.msrb.mxu0 %v2483_v33  ;;  %1061 = vmatpush.bf16.msrb.mxu1 %v2489_v5 }
 0x275   : > { %794 = vmatpush.bf16.msrb.mxu3 %v791_v51 }
 0x278   : > { %920 = vmatpush.bf16.msrb.mxu0 %v2482_v39  ;;  %1062 = vmatpush.bf16.msrb.mxu1 %v2488_v15 }
 0x279   : > { %795 = vmatpush.bf16.msrb.mxu3 %v790_v59 }
 0x27c   : > { %921 = vmatpush.bf16.msrb.mxu0 %v2481_v40  ;;  %1063 = vmatpush.bf16.msrb.mxu1 %v2487_v16 }
 0x27d   : > { %796 = vmatpush.bf16.msrb.mxu3 %v789_v21  ;;  %v2486_v21 = vld [vmem:[#allocation7 + $0xc0] sm:$0xff] }
 0x280   : > { %922 = vmatpush.bf16.msrb.mxu0 %v2480_v41  ;;  %1064 = vmatpush.bf16.msrb.mxu1 %v2486_v21 }
 0x281   : > { %797 = vmatpush.bf16.msrb.mxu3 %v788_v3 }
 0x284   : > { %923 = vmatpush.bf16.msrb.mxu0 %v2479_v42 }
 0x285   : > { %798 = vmatpush.bf16.msrb.mxu3 %v787_v6 }
 0x288   : > { %924 = vmatpush.bf16.msrb.mxu0 %v2478_v43 }
 0x289   : > { %799 = vmatpush.bf16.msrb.mxu3 %v786_v34 }
 0x28d   : > { %800 = vmatpush.bf16.msrb.mxu3 %v785_v37 }
 0x290   : > { %801 = vmatmul.bf16.vlgmr.msrb.gmra.mxu3 %v3102_v11 }
 0x2a0   : > { %806 = vmatmul.bf16.gmra.mxu3 %v3110_v13 }
 0x2b0   : > { %811 = vmatmul.bf16.gmra.mxu3 %v3090_v8 }
 0x2c0   : > { %816 = vmatmul.bf16.gmra.mxu3 %v3094_v9 }
 0x2d0   : > { %821 = vmatmul.bf16.gmra.mxu3 %v3098_v10 }
 0x2e0   : > { %826 = vmatmul.bf16.gmra.mxu3 %v3106_v12 }
 0x2f0   : > { %831 = vmatmul.bf16.gmra.mxu3 %v3114_v18 }
 0x300   : > { %836 = vmatmul.bf16.gmra.mxu3 %v3118_v20 }
 0x313   : > { %v802_v44 = vpop.f32.mrf.mxu3 }
 0x31b   : > { %v804_v45 = vpop.f32.mrf.mxu3 }
 0x31c   : > { %v842_v46 = vpack.c.bf16 %v804_v45, %v802_v44 }
 0x31e   : > { %925 = vmatmul.bf16.vlgmr.msrb.gmra.mxu0 %v842_v46 }
 0x323   : > { %v807_v47 = vpop.f32.mrf.mxu3 }
 0x32b   : > { %v809_v48 = vpop.f32.mrf.mxu3 }
 0x32c   : > { %v843_v49 = vpack.c.bf16 %v809_v48, %v807_v47 }
 0x32e   : > { %930 = vmatmul.bf16.gmra.mxu0 %v843_v49 }
 0x333   : > { %v812_v50 = vpop.f32.mrf.mxu3 }
 0x33b   : > { %v814_v51 = vpop.f32.mrf.mxu3 }
 0x33c   : > { %v844_v52 = vpack.c.bf16 %v814_v51, %v812_v50 }
 0x33e   : > { %935 = vmatmul.bf16.gmra.mxu0 %v844_v52 }
 0x343   : > { %v817_v53 = vpop.f32.mrf.mxu3 }
 0x34b   : > { %v819_v54 = vpop.f32.mrf.mxu3 }
 0x34c   : > { %v845_v55 = vpack.c.bf16 %v819_v54, %v817_v53 }
 0x34e   : > { %940 = vmatmul.bf16.gmra.mxu0 %v845_v55 }
 0x353   : > { %v822_v56 = vpop.f32.mrf.mxu3 }
 0x35b   : > { %v824_v60 = vpop.f32.mrf.mxu3 }
 0x35c   : > { %v846_v61 = vpack.c.bf16 %v824_v60, %v822_v56 }
 0x35e   : > { %945 = vmatmul.bf16.gmra.mxu0 %v846_v61 }
 0x363   : > { %v827_v62 = vpop.f32.mrf.mxu3 }
 0x36b   : > { %v829_v0 = vpop.f32.mrf.mxu3 }
 0x36c   : > { %v847_v59 = vpack.c.bf16 %v829_v0, %v827_v62 }
 0x36e   : > { %950 = vmatmul.bf16.gmra.mxu0 %v847_v59 }
 0x373   : > { %v832_v4 = vpop.f32.mrf.mxu3 }
 0x37b   : > { %v834_v14 = vpop.f32.mrf.mxu3 }
 0x37c   : > { %v848_v57 = vpack.c.bf16 %v834_v14, %v832_v4 }
 0x37e   : > { %955 = vmatmul.bf16.gmra.mxu0 %v848_v57 }
 0x383   : > { %v837_v17 = vpop.f32.mrf.mxu3 }
 0x38b   : > { %v839_v22 = vpop.f32.mrf.mxu3 }
 0x38c   : > { %v849_v23 = vpack.c.bf16 %v839_v22, %v837_v17 }
 0x38e   : > { %960 = vmatmul.bf16.gmra.mxu0 %v849_v23 }
 0x39b   : > { %v926_v24 = vpop.f32.mrf.mxu0 }
 0x39c   : > { %v927_v26 = vadd.f32 %v2633_v25, %v926_v24 }
 0x39e   : > { %v966_v3 = vmax.f32 %v927_v26, 0.0 }
 0x3a3   : > { %v928_v27 = vpop.f32.mrf.mxu0 }
 0x3a4   : > { %v929_v28 = vadd.f32 %v2633_v25, %v928_v27 }
 0x3a6   : > { %v967_v29 = vmax.f32 %v929_v28, 0.0 }
 0x3a8   : > { %v982_v6 = vpack.c.bf16 %v967_v29, %v966_v3 }
 0x3aa   : > { %1065 = vmatmul.bf16.vlgmr.msrb.gmra.mxu1 %v982_v6 }
 0x3ab   : > { %v931_v7 = vpop.f32.mrf.mxu0 }
 0x3ac   : > { %v932_v30 = vadd.f32 %v2633_v25, %v931_v7 }
 0x3ae   : > { %v968_v34 = vmax.f32 %v932_v30, 0.0 }
 0x3b3   : > { %v933_v31 = vpop.f32.mrf.mxu0 }
 0x3b4   : > { %v934_v32 = vadd.f32 %v2633_v25, %v933_v31 }
 0x3b6   : > { %v969_v35 = vmax.f32 %v934_v32, 0.0 }
 0x3b8   : > { %v983_v36 = vpack.c.bf16 %v969_v35, %v968_v34 }
 0x3ba   : > { %1070 = vmatmul.bf16.gmra.mxu1 %v983_v36 }
 0x3bb   : > { %v936_v37 = vpop.f32.mrf.mxu0 }
 0x3bc   : > { %v937_v19 = vadd.f32 %v2633_v25, %v936_v37 }
 0x3be   : > { %v970_v39 = vmax.f32 %v937_v19, 0.0  ;;  %v2634_v19 = vld [vmem:[#allocation8 + $0x5] ss:$0 sm:$0xff] }
 0x3c3   : > { %v938_v38 = vpop.f32.mrf.mxu0 }
 0x3c4   : > { %v939_v33 = vadd.f32 %v2633_v25, %v938_v38 }
 0x3c6   : > { %v971_v40 = vmax.f32 %v939_v33, 0.0 }
 0x3c8   : > { %v984_v41 = vpack.c.bf16 %v971_v40, %v970_v39 }
 0x3ca   : > { %1075 = vmatmul.bf16.gmra.mxu1 %v984_v41 }
 0x3cb   : > { %v941_v42 = vpop.f32.mrf.mxu0 }
 0x3cc   : > { %v942_v43 = vadd.f32 %v2633_v25, %v941_v42  ;;  %v3169_v42 = vld [vmem:[#allocation8 + $0x6] ss:$0 sm:$0xff] }
 0x3ce   : > { %v972_v46 = vmax.f32 %v942_v43, 0.0 }
 0x3d3   : > { %v943_v44 = vpop.f32.mrf.mxu0 }
 0x3d4   : > { %v944_v45 = vadd.f32 %v2633_v25, %v943_v44 }
 0x3d6   : > { %v973_v47 = vmax.f32 %v944_v45, 0.0 }
 0x3d8   : > { %v985_v48 = vpack.c.bf16 %v973_v47, %v972_v46 }
 0x3da   : > { %1080 = vmatmul.bf16.gmra.mxu1 %v985_v48 }
 0x3db   : > { %v946_v49 = vpop.f32.mrf.mxu0 }
 0x3dc   : > { %v947_v50 = vadd.f32 %v2633_v25, %v946_v49 }
 0x3de   : > { %v974_v53 = vmax.f32 %v947_v50, 0.0 }
 0x3e3   : > { %v948_v51 = vpop.f32.mrf.mxu0 }
 0x3e4   : > { %v949_v52 = vadd.f32 %v2633_v25, %v948_v51 }
 0x3e6   : > { %v975_v54 = vmax.f32 %v949_v52, 0.0 }
 0x3e8   : > { %v986_v55 = vpack.c.bf16 %v975_v54, %v974_v53  ;;  %v3174_v54 = vld [vmem:[#allocation8 + $0x7] ss:$0 sm:$0xff] }
 0x3ea   : > { %1085 = vmatmul.bf16.gmra.mxu1 %v986_v55 }
 0x3eb   : > { %v951_v56 = vpop.f32.mrf.mxu0 }
 0x3ec   : > { %v952_v60 = vadd.f32 %v2633_v25, %v951_v56 }
 0x3ee   : > { %v976_v63 = vmax.f32 %v952_v60, 0.0 }
 0x3f3   : > { %v953_v61 = vpop.f32.mrf.mxu0 }
 0x3f4   : > { %v954_v62 = vadd.f32 %v2633_v25, %v953_v61 }
 0x3f6   : > { %v977_v0 = vmax.f32 %v954_v62, 0.0 }
 0x3f8   : > { %v987_v59 = vpack.c.bf16 %v977_v0, %v976_v63 }
 0x3fa   : > { %1090 = vmatmul.bf16.gmra.mxu1 %v987_v59 }
 0x3fb   : > { %v956_v1 = vpop.f32.mrf.mxu0 }
 0x3fc   : > { %v957_v2 = vadd.f32 %v2633_v25, %v956_v1 }
 0x3fe   : > { %v978_v5 = vmax.f32 %v957_v2, 0.0 }
 0x403   : > { %v958_v4 = vpop.f32.mrf.mxu0 }
 0x404   : > { %v959_v58 = vadd.f32 %v2633_v25, %v958_v4 }
 0x406   : > { %v979_v14 = vmax.f32 %v959_v58, 0.0 }
 0x408   : > { %v988_v57 = vpack.c.bf16 %v979_v14, %v978_v5 }
 0x40a   : > { %1095 = vmatmul.bf16.gmra.mxu1 %v988_v57 }
 0x40b   : > { %v961_v15 = vpop.f32.mrf.mxu0 }
 0x40c   : > { %v962_v16 = vadd.f32 %v2633_v25, %v961_v15 }
 0x40e   : > { %v980_v22 = vmax.f32 %v962_v16, 0.0 }
 0x413   : > { %v963_v17 = vpop.f32.mrf.mxu0 }
 0x414   : > { %v964_v21 = vadd.f32 %v2633_v25, %v963_v17 }
 0x416   : > { %v981_v23 = vmax.f32 %v964_v21, 0.0 }
 0x418   : > { %v989_v24 = vpack.c.bf16 %v981_v23, %v980_v22 }
 0x41a   : > { %1100 = vmatmul.bf16.gmra.mxu1 %v989_v24 }
 0x427   : > { %v3165_v26 = vpop.f32.mrf.mxu1 }
 0x42f   : > { %v3167_v27 = vpop.f32.mrf.mxu1 }
 0x437   : > { %v1071_v28 = vpop.f32.mrf.mxu1 }
 0x43f   : > { %v1073_v3 = vpop.f32.mrf.mxu1 }
 0x447   : > { %v1076_v29 = vpop.f32.mrf.mxu1 }
 0x448   : > { %v1077_v22 = vadd.f32 %v2634_v19, %v1076_v29 }
 0x44f   : > { %v1078_v6 = vpop.f32.mrf.mxu1 }
 0x450   : > { %v1079_v57 = vadd.f32 %v2634_v19, %v1078_v6 }
 0x457   : > { %v1081_v7 = vpop.f32.mrf.mxu1 }
 0x458   : > { %v1082_v4 = vadd.f32 %v2634_v19, %v1081_v7 }
 0x45a   : > { %v1112_v23 = vmax.f32 %v1082_v4, 0.0 }
 0x45f   : > { %v1083_v30 = vpop.f32.mrf.mxu1 }
 0x460   : > { %v1084_v63 = vadd.f32 %v2634_v19, %v1083_v30  ;;  %v1074_v30 = vadd.f32 %v2634_v19, %v1073_v3 }
 0x462   : > { %v1113_v15 = vmax.f32 %v1084_v63, 0.0  ;;  %v2497_v63 = vld [vmem:[#allocation7 + $0x118] sm:$0xff] }
 0x467   : > { %v1086_v31 = vpop.f32.mrf.mxu1 }
 0x468   : > { %v1087_v55 = vadd.f32 %v2634_v19, %v1086_v31  ;;  %v1111_v31 = vmax.f32 %v1079_v57, 0.0  ;;  %v2509_v57 = vld [vmem:[#allocation7 + $0x178] sm:$0xff] }
 0x469   : > { %1430 = vmatpush.bf16.msra.mxu0 %v2509_v57 }
 0x46a   : > { %v1114_v58 = vmax.f32 %v1087_v55, 0.0 }
 0x46c   : > { %v1132_v24 = vmul.f32 %v3169_v42, %v1114_v58 }
 0x46e   : > { %v1150_v29 = vadd.f32 %v3174_v54, %v1132_v24  ;;  %v2507_v24 = vld [vmem:[#allocation7 + $0x168] sm:$0xff] }
 0x46f   : > { %v1088_v32 = vpop.f32.mrf.mxu1 }
 0x470   : > { %v1089_v50 = vadd.f32 %v2634_v19, %v1088_v32  ;;  %v1131_v32 = vmul.f32 %v3169_v42, %v1113_v15 }
 0x472   : > { %v1115_v0 = vmax.f32 %v1089_v50, 0.0  ;;  %v1149_v3 = vadd.f32 %v3174_v54, %v1131_v32 }
 0x474   : > { %v1133_v16 = vmul.f32 %v3169_v42, %v1115_v0 }
 0x476   : > { %v1151_v6 = vadd.f32 %v3174_v54, %v1133_v16 }
 0x477   : > { %v1091_v34 = vpop.f32.mrf.mxu1 }
 0x478   : > { %v1092_v46 = vadd.f32 %v2634_v19, %v1091_v34 }
 0x47a   : > { %v1116_v56 = vmax.f32 %v1092_v46, 0.0 }
 0x47c   : > { %v1134_v5 = vmul.f32 %v3169_v42, %v1116_v56 }
 0x47e   : > { %v1152_v7 = vadd.f32 %v3174_v54, %v1134_v5 }
 0x47f   : > { %v1093_v35 = vpop.f32.mrf.mxu1 }
 0x480   : > { %v1094_v43 = vadd.f32 %v2634_v19, %v1093_v35  ;;  %v1072_v35 = vadd.f32 %v2634_v19, %v1071_v28 }
 0x482   : > { %v1117_v51 = vmax.f32 %v1094_v43, 0.0 }
 0x484   : > { %v1135_v59 = vmul.f32 %v3169_v42, %v1117_v51 }
 0x486   : > { %v1153_v21 = vadd.f32 %v3174_v54, %v1135_v59 }
 0x487   : > { %v1096_v36 = vpop.f32.mrf.mxu1 }
 0x488   : > { %v1097_v39 = vadd.f32 %v2634_v19, %v1096_v36  ;;  %v1163_v34 = vpack.c.bf16 %v1153_v21, %v1152_v7  ;;  %v1110_v36 = vmax.f32 %v1077_v22, 0.0  ;;  %v2506_v7 = vld [vmem:[#allocation7 + $0x160] sm:$0xff] }
 0x48a   : > { %v1118_v47 = vmax.f32 %v1097_v39, 0.0  ;;  %v1162_v39 = vpack.c.bf16 %v1151_v6, %v1150_v29  ;;  %v1128_v43 = vmul.f32 %v3169_v42, %v1110_v36  ;;  %v2503_v36 = vld [vmem:[#allocation7 + $0x148] sm:$0xff]  ;;  %v2502_v29 = vld [vmem:[#allocation7 + $0x140] sm:$0xff] }
 0x48c   : > { %v1136_v60 = vmul.f32 %v3169_v42, %v1118_v47 }
 0x48e   : > { %v1154_v14 = vadd.f32 %v3174_v54, %v1136_v60 }
 0x48f   : > { %v1098_v25 = vpop.f32.mrf.mxu1 }
 0x490   : > { %v1099_v33 = vadd.f32 %v2634_v19, %v1098_v25  ;;  %v1130_v25 = vmul.f32 %v3169_v42, %v1112_v23 }
 0x492   : > { %v1119_v44 = vmax.f32 %v1099_v33, 0.0  ;;  %v1129_v33 = vmul.f32 %v3169_v42, %v1111_v31  ;;  %v1148_v28 = vadd.f32 %v3174_v54, %v1130_v25 }
 0x494   : > { %v1137_v52 = vmul.f32 %v3169_v42, %v1119_v44  ;;  %v1161_v46 = vpack.c.bf16 %v1149_v3, %v1148_v28 }
 0x496   : > { %v1155_v2 = vadd.f32 %v3174_v54, %v1137_v52 }
 0x497   : > { %v1101_v37 = vpop.f32.mrf.mxu1 }
 0x498   : > { %v1102_v38 = vadd.f32 %v2634_v19, %v1101_v37  ;;  %v1164_v17 = vpack.c.bf16 %v1155_v2, %v1154_v14  ;;  %v1069_v37 = vadd.f32 %v2634_v19, %v3167_v27  ;;  %v1147_v27 = vadd.f32 %v3174_v54, %v1129_v33  ;;  %v3215_v33 = vld [vmem:[#allocation8 + $0x8] ss:$0 sm:$0xff] }
 0x49a   : > { %v1120_v40 = vmax.f32 %v1102_v38, 0.0  ;;  %v1109_v38 = vmax.f32 %v1074_v30, 0.0  ;;  %v1107_v44 = vmax.f32 %v1069_v37, 0.0 }
 0x49c   : > { %v1138_v48 = vmul.f32 %v3169_v42, %v1120_v40  ;;  %v1067_v40 = vadd.f32 %v2634_v19, %v3165_v26  ;;  %v1125_v26 = vmul.f32 %v3169_v42, %v1107_v44 }
 0x49e   : > { %v1156_v61 = vadd.f32 %v3174_v54, %v1138_v48  ;;  %v1106_v47 = vmax.f32 %v1067_v40, 0.0  ;;  %v1143_v55 = vadd.f32 %v3174_v54, %v1125_v26 }
 0x49f   : > { %v1103_v41 = vpop.f32.mrf.mxu1 }
 0x4a0   : > { %v1104_v45 = vadd.f32 %v2634_v19, %v1103_v41  ;;  %v1108_v41 = vmax.f32 %v1072_v35, 0.0  ;;  %v1124_v51 = vmul.f32 %v3169_v42, %v1106_v47  ;;  %v2504_v35 = vld [vmem:[#allocation7 + $0x150] sm:$0xff] }
 0x4a2   : > { %v1121_v49 = vmax.f32 %v1104_v45, 0.0  ;;  %v1127_v45 = vmul.f32 %v3169_v42, %v1109_v38  ;;  %v1126_v48 = vmul.f32 %v3169_v42, %v1108_v41  ;;  %v1142_v56 = vadd.f32 %v3174_v54, %v1124_v51 }
 0x4a4   : > { %v1139_v53 = vmul.f32 %v3169_v42, %v1121_v49  ;;  %v1146_v49 = vadd.f32 %v3174_v54, %v1128_v43  ;;  %v1145_v50 = vadd.f32 %v3174_v54, %v1127_v45  ;;  %v1144_v52 = vadd.f32 %v3174_v54, %v1126_v48  ;;  %v2500_v42 = vld [vmem:[#allocation7 + $0x130] sm:$0xff] }
 0x4a5   : > { %v1158_v60 = vpack.c.bf16 %v1143_v55, %v1142_v56 }
 0x4a6   : > { %v1157_v62 = vadd.f32 %v3174_v54, %v1139_v53  ;;  %v1160_v19 = vpack.c.bf16 %v1147_v27, %v1146_v49  ;;  %v1159_v53 = vpack.c.bf16 %v1145_v50, %v1144_v52  ;;  %v2498_v54 = vld [vmem:[#allocation7 + $0x120] sm:$0xff] }
 0x4a8   : > { %v1165_v1 = vpack.c.bf16 %v1157_v62, %v1156_v61  ;;  %v2501_v61 = vld [vmem:[#allocation7 + $0x138] sm:$0xff]  ;;  %v2499_v62 = vld [vmem:[#allocation7 + $0x128] sm:$0xff] }
 0x4a9   : > { %1290 = vmatpush.bf16.msra.mxu3 %v2501_v61 }
 0x4aa   : > { %1166 = vmatpush.bf16.msrb.mxu2 %v1165_v1 }
 0x4ad   : > { %1291 = vmatpush.bf16.msra.mxu3 %v2500_v42 }
 0x4ae   : > { %1167 = vmatpush.bf16.msrb.mxu2 %v1164_v17  ;;  %v2508_v17 = vld [vmem:[#allocation7 + $0x170] sm:$0xff] }
 0x4af   : > { %1431 = vmatpush.bf16.msra.mxu0 %v2508_v17 }
 0x4b1   : > { %1292 = vmatpush.bf16.msra.mxu3 %v2499_v62 }
 0x4b2   : > { %1168 = vmatpush.bf16.msrb.mxu2 %v1163_v34  ;;  %v2505_v34 = vld [vmem:[#allocation7 + $0x158] sm:$0xff] }
 0x4b3   : > { %1432 = vmatpush.bf16.msra.mxu0 %v2507_v24 }
 0x4b5   : > { %1293 = vmatpush.bf16.msra.mxu3 %v2498_v54 }
 0x4b6   : > { %1169 = vmatpush.bf16.msrb.mxu2 %v1162_v39 }
 0x4b7   : > { %1433 = vmatpush.bf16.msra.mxu0 %v2506_v7 }
 0x4b9   : > { %1294 = vmatpush.bf16.msra.mxu3 %v2497_v63 }
 0x4ba   : > { %1170 = vmatpush.bf16.msrb.mxu2 %v1161_v46 }
 0x4bb   : > { %1434 = vmatpush.bf16.msra.mxu0 %v2505_v34  ;;  %v2511_v34 = vld [vmem:[#allocation7 + $0x188] sm:$0xff] }
 0x4be   : > { %1171 = vmatpush.bf16.msrb.mxu2 %v1160_v19 }
 0x4bf   : > { %1435 = vmatpush.bf16.msra.mxu0 %v2504_v35 }
 0x4c2   : > { %1172 = vmatpush.bf16.msrb.mxu2 %v1159_v53 }
 0x4c3   : > { %1436 = vmatpush.bf16.msra.mxu0 %v2503_v36 }
 0x4c6   : > { %1173 = vmatpush.bf16.msrb.mxu2 %v1158_v60 }
 0x4c7   : > { %1437 = vmatpush.bf16.msra.mxu0 %v2502_v29 }
 0x4c9   : > { %1174 = vmatmul.bf16.vlgmr.msrb.gmra.mxu2 %v3102_v11  ;;  %v2496_v11 = vld [vmem:[#allocation7 + $0x110] sm:$0xff] }
 0x4ca   : > { %1295 = vmatpush.bf16.msra.mxu3 %v2496_v11 }
 0x4d9   : > { %1179 = vmatmul.bf16.gmra.mxu2 %v3110_v13  ;;  %v2494_v13 = vld [vmem:[#allocation7 + $0x100] sm:$0xff] }
 0x4e9   : > { %1184 = vmatmul.bf16.gmra.mxu2 %v3090_v8  ;;  %v2495_v8 = vld [vmem:[#allocation7 + $0x108] sm:$0xff] }
 0x4ea   : > { %1296 = vmatpush.bf16.msra.mxu3 %v2495_v8  ;;  %v2517_v8 = vld [vmem:[#allocation7 + $0x1b8] sm:$0xff] }
 0x4eb   : > { %1606 = vmatpush.bf16.msra.mxu1 %v2517_v8 }
 0x4ee   : > { %1297 = vmatpush.bf16.msra.mxu3 %v2494_v13 }
 0x4f9   : > { %1189 = vmatmul.bf16.gmra.mxu2 %v3094_v9 }
 0x509   : > { %1194 = vmatmul.bf16.gmra.mxu2 %v3098_v10 }
 0x519   : > { %1199 = vmatmul.bf16.gmra.mxu2 %v3106_v12 }
 0x529   : > { %1204 = vmatmul.bf16.gmra.mxu2 %v3114_v18 }
 0x539   : > { %1209 = vmatmul.bf16.gmra.mxu2 %v3118_v20 }
 0x54c   : > { %v1175_v9 = vpop.f32.mrf.mxu2 }
 0x554   : > { %v1177_v10 = vpop.f32.mrf.mxu2 }
 0x555   : > { %v1215_v0 = vpack.c.bf16 %v1177_v10, %v1175_v9 }
 0x557   : > { %1298 = vmatmul.bf16.vlgmr.msra.gmra.mxu3 %v1215_v0 }
 0x55c   : > { %v1180_v59 = vpop.f32.mrf.mxu2 }
 0x564   : > { %v1182_v12 = vpop.f32.mrf.mxu2 }
 0x565   : > { %v1216_v1 = vpack.c.bf16 %v1182_v12, %v1180_v59 }
 0x567   : > { %1303 = vmatmul.bf16.gmra.mxu3 %v1216_v1 }
 0x56c   : > { %v1185_v2 = vpop.f32.mrf.mxu2 }
 0x574   : > { %v1187_v4 = vpop.f32.mrf.mxu2 }
 0x575   : > { %v1217_v58 = vpack.c.bf16 %v1187_v4, %v1185_v2  ;;  %v2516_v2 = vld [vmem:[#allocation7 + $0x1b0] sm:$0xff] }
 0x576   : > { %1607 = vmatpush.bf16.msra.mxu1 %v2516_v2 }
 0x577   : > { %1308 = vmatmul.bf16.gmra.mxu3 %v1217_v58 }
 0x57c   : > { %v1190_v18 = vpop.f32.mrf.mxu2 }
 0x584   : > { %v1192_v5 = vpop.f32.mrf.mxu2 }
 0x585   : > { %v1218_v14 = vpack.c.bf16 %v1192_v5, %v1190_v18 }
 0x587   : > { %1313 = vmatmul.bf16.gmra.mxu3 %v1218_v14 }
 0x58c   : > { %v1195_v15 = vpop.f32.mrf.mxu2 }
 0x594   : > { %v1197_v20 = vpop.f32.mrf.mxu2 }
 0x595   : > { %v1219_v16 = vpack.c.bf16 %v1197_v20, %v1195_v15  ;;  %v2515_v15 = vld [vmem:[#allocation7 + $0x1a8] sm:$0xff] }
 0x596   : > { %1608 = vmatpush.bf16.msra.mxu1 %v2515_v15 }
 0x597   : > { %1318 = vmatmul.bf16.gmra.mxu3 %v1219_v16 }
 0x59c   : > { %v1200_v21 = vpop.f32.mrf.mxu2 }
 0x5a4   : > { %v1202_v22 = vpop.f32.mrf.mxu2 }
 0x5a5   : > { %v1220_v23 = vpack.c.bf16 %v1202_v22, %v1200_v21  ;;  %v2514_v22 = vld [vmem:[#allocation7 + $0x1a0] sm:$0xff] }
 0x5a6   : > { %1609 = vmatpush.bf16.msra.mxu1 %v2514_v22 }
 0x5a7   : > { %1323 = vmatmul.bf16.gmra.mxu3 %v1220_v23 }
 0x5ac   : > { %v1205_v30 = vpop.f32.mrf.mxu2 }
 0x5b4   : > { %v1207_v31 = vpop.f32.mrf.mxu2 }
 0x5b5   : > { %v1221_v32 = vpack.c.bf16 %v1207_v31, %v1205_v30  ;;  %v2513_v30 = vld [vmem:[#allocation7 + $0x198] sm:$0xff] }
 0x5b6   : > { %1610 = vmatpush.bf16.msra.mxu1 %v2513_v30 }
 0x5b7   : > { %1328 = vmatmul.bf16.gmra.mxu3 %v1221_v32  ;;  %v2512_v32 = vld [vmem:[#allocation7 + $0x190] sm:$0xff] }
 0x5ba   : > { %1611 = vmatpush.bf16.msra.mxu1 %v2512_v32 }
 0x5bc   : > { %v1210_v6 = vpop.f32.mrf.mxu2 }
 0x5be   : > { %1612 = vmatpush.bf16.msra.mxu1 %v2511_v34 }
 0x5c4   : > { %v1212_v25 = vpop.f32.mrf.mxu2 }
 0x5c5   : > { %v1222_v37 = vpack.c.bf16 %v1212_v25, %v1210_v6  ;;  %v2510_v25 = vld [vmem:[#allocation7 + $0x180] sm:$0xff] }
 0x5c6   : > { %1613 = vmatpush.bf16.msra.mxu1 %v2510_v25 }
 0x5c7   : > { %1333 = vmatmul.bf16.gmra.mxu3 %v1222_v37 }
 0x5da   : > { %v1299_v38 = vpop.f32.mrf.mxu3 }
 0x5db   : > { %v1300_v39 = vadd.f32 %v3215_v33, %v1299_v38 }
 0x5dd   : > { %v1339_v41 = vmax.f32 %v1300_v39, 0.0  ;;  %v3233_v39 = vld [vmem:[#allocation8 + $0x9] ss:$0 sm:$0xff] }
 0x5e2   : > { %v1301_v3 = vpop.f32.mrf.mxu3 }
 0x5e3   : > { %v1302_v40 = vadd.f32 %v3215_v33, %v1301_v3 }
 0x5e5   : > { %v1340_v43 = vmax.f32 %v1302_v40, 0.0 }
 0x5e7   : > { %v1355_v28 = vpack.c.bf16 %v1340_v43, %v1339_v41  ;;  %v3236_v43 = vld [vmem:[#allocation8 + $0xa] ss:$0 sm:$0xff] }
 0x5e9   : > { %1438 = vmatmul.bf16.vlgmr.msra.gmra.mxu0 %v1355_v28 }
 0x5ea   : > { %v1304_v44 = vpop.f32.mrf.mxu3 }
 0x5eb   : > { %v1305_v45 = vadd.f32 %v3215_v33, %v1304_v44 }
 0x5ed   : > { %v1341_v47 = vmax.f32 %v1305_v45, 0.0 }
 0x5f2   : > { %v1306_v46 = vpop.f32.mrf.mxu3 }
 0x5f3   : > { %v1307_v27 = vadd.f32 %v3215_v33, %v1306_v46 }
 0x5f5   : > { %v1342_v48 = vmax.f32 %v1307_v27, 0.0 }
 0x5f7   : > { %v1356_v49 = vpack.c.bf16 %v1342_v48, %v1341_v47 }
 0x5f9   : > { %1443 = vmatmul.bf16.gmra.mxu0 %v1356_v49 }
 0x5fa   : > { %v1309_v26 = vpop.f32.mrf.mxu3 }
 0x5fb   : > { %v1310_v19 = vadd.f32 %v3215_v33, %v1309_v26 }
 0x5fd   : > { %v1343_v52 = vmax.f32 %v1310_v19, 0.0 }
 0x602   : > { %v1311_v50 = vpop.f32.mrf.mxu3 }
 0x603   : > { %v1312_v51 = vadd.f32 %v3215_v33, %v1311_v50 }
 0x605   : > { %v1344_v53 = vmax.f32 %v1312_v51, 0.0 }
 0x607   : > { %v1357_v55 = vpack.c.bf16 %v1344_v53, %v1343_v52 }
 0x609   : > { %1448 = vmatmul.bf16.gmra.mxu0 %v1357_v55 }
 0x60a   : > { %v1314_v56 = vpop.f32.mrf.mxu3 }
 0x60b   : > { %v1315_v60 = vadd.f32 %v3215_v33, %v1314_v56 }
 0x60d   : > { %v1345_v62 = vmax.f32 %v1315_v60, 0.0 }
 0x612   : > { %v1316_v61 = vpop.f32.mrf.mxu3 }
 0x613   : > { %v1317_v42 = vadd.f32 %v3215_v33, %v1316_v61 }
 0x615   : > { %v1346_v54 = vmax.f32 %v1317_v42, 0.0 }
 0x617   : > { %v1358_v63 = vpack.c.bf16 %v1346_v54, %v1345_v62 }
 0x619   : > { %1453 = vmatmul.bf16.gmra.mxu0 %v1358_v63 }
 0x61a   : > { %v1319_v11 = vpop.f32.mrf.mxu3 }
 0x61b   : > { %v1320_v13 = vadd.f32 %v3215_v33, %v1319_v11 }
 0x61d   : > { %v1347_v0 = vmax.f32 %v1320_v13, 0.0 }
 0x622   : > { %v1321_v9 = vpop.f32.mrf.mxu3 }
 0x623   : > { %v1322_v10 = vadd.f32 %v3215_v33, %v1321_v9 }
 0x625   : > { %v1348_v59 = vmax.f32 %v1322_v10, 0.0 }
 0x627   : > { %v1359_v12 = vpack.c.bf16 %v1348_v59, %v1347_v0 }
 0x629   : > { %1458 = vmatmul.bf16.gmra.mxu0 %v1359_v12 }
 0x62a   : > { %v1324_v1 = vpop.f32.mrf.mxu3 }
 0x62b   : > { %v1325_v4 = vadd.f32 %v3215_v33, %v1324_v1 }
 0x62d   : > { %v1349_v5 = vmax.f32 %v1325_v4, 0.0 }
 0x632   : > { %v1326_v58 = vpop.f32.mrf.mxu3 }
 0x633   : > { %v1327_v18 = vadd.f32 %v3215_v33, %v1326_v58 }
 0x635   : > { %v1350_v14 = vmax.f32 %v1327_v18, 0.0 }
 0x637   : > { %v1360_v57 = vpack.c.bf16 %v1350_v14, %v1349_v5 }
 0x639   : > { %1463 = vmatmul.bf16.gmra.mxu0 %v1360_v57 }
 0x63a   : > { %v1329_v20 = vpop.f32.mrf.mxu3 }
 0x63b   : > { %v1330_v16 = vadd.f32 %v3215_v33, %v1329_v20 }
 0x63d   : > { %v1351_v23 = vmax.f32 %v1330_v16, 0.0 }
 0x642   : > { %v1331_v17 = vpop.f32.mrf.mxu3 }
 0x643   : > { %v1332_v21 = vadd.f32 %v3215_v33, %v1331_v17 }
 0x645   : > { %v1352_v24 = vmax.f32 %v1332_v21, 0.0 }
 0x647   : > { %v1361_v7 = vpack.c.bf16 %v1352_v24, %v1351_v23  ;;  %v2525_v23 = vld [vmem:[#allocation7 + $0x1f8] sm:$0xff] }
 0x648   : > { %1746 = vmatpush.bf16.msra.mxu2 %v2525_v23 }
 0x649   : > { %1468 = vmatmul.bf16.gmra.mxu0 %v1361_v7 }
 0x64a   : > { %v1334_v31 = vpop.f32.mrf.mxu3 }
 0x64b   : > { %v1335_v6 = vadd.f32 %v3215_v33, %v1334_v31 }
 0x64d   : > { %v1353_v29 = vmax.f32 %v1335_v6, 0.0 }
 0x652   : > { %v1336_v35 = vpop.f32.mrf.mxu3 }
 0x653   : > { %v1337_v36 = vadd.f32 %v3215_v33, %v1336_v35  ;;  %v3240_v33 = vld [vmem:[#allocation8 + $0xb] ss:$0 sm:$0xff] }
 0x655   : > { %v1354_v37 = vmax.f32 %v1337_v36, 0.0 }
 0x657   : > { %v1362_v38 = vpack.c.bf16 %v1354_v37, %v1353_v29  ;;  %v2524_v37 = vld [vmem:[#allocation7 + $0x1f0] sm:$0xff] }
 0x658   : > { %1747 = vmatpush.bf16.msra.mxu2 %v2524_v37 }
 0x659   : > { %1473 = vmatmul.bf16.gmra.mxu0 %v1362_v38 }
 0x666   : > { %v1439_v3 = vpop.f32.mrf.mxu0 }
 0x667   : > { %v1440_v40 = vadd.f32 %v3233_v39, %v1439_v3 }
 0x669   : > { %v1479_v41 = vmax.f32 %v1440_v40, 0.0 }
 0x66b   : > { %v1497_v45 = vmul.f32 %v3236_v43, %v1479_v41 }
 0x66d   : > { %v1515_v47 = vadd.f32 %v3240_v33, %v1497_v45 }
 0x66e   : > { %v1441_v28 = vpop.f32.mrf.mxu0 }
 0x66f   : > { %v1442_v44 = vadd.f32 %v3233_v39, %v1441_v28 }
 0x671   : > { %v1480_v46 = vmax.f32 %v1442_v44, 0.0 }
 0x673   : > { %v1498_v27 = vmul.f32 %v3236_v43, %v1480_v46  ;;  %v2523_v46 = vld [vmem:[#allocation7 + $0x1e8] sm:$0xff] }
 0x674   : > { %1748 = vmatpush.bf16.msra.mxu2 %v2523_v46 }
 0x675   : > { %v1516_v48 = vadd.f32 %v3240_v33, %v1498_v27 }
 0x676   : > { %v1444_v49 = vpop.f32.mrf.mxu0 }
 0x677   : > { %v1531_v26 = vpack.c.bf16 %v1516_v48, %v1515_v47  ;;  %v1445_v19 = vadd.f32 %v3233_v39, %v1444_v49  ;;  %v2522_v49 = vld [vmem:[#allocation7 + $0x1e0] sm:$0xff] }
 0x678   : > { %1749 = vmatpush.bf16.msra.mxu2 %v2522_v49 }
 0x679   : > { %1614 = vmatmul.bf16.vlgmr.msra.gmra.mxu1 %v1531_v26  ;;  %v1481_v50 = vmax.f32 %v1445_v19, 0.0 }
 0x67b   : > { %v1499_v53 = vmul.f32 %v3236_v43, %v1481_v50 }
 0x67d   : > { %v1517_v60 = vadd.f32 %v3240_v33, %v1499_v53 }
 0x67e   : > { %v1446_v51 = vpop.f32.mrf.mxu0 }
 0x67f   : > { %v1447_v52 = vadd.f32 %v3233_v39, %v1446_v51 }
 0x681   : > { %v1482_v55 = vmax.f32 %v1447_v52, 0.0 }
 0x683   : > { %v1500_v56 = vmul.f32 %v3236_v43, %v1482_v55  ;;  %v2521_v55 = vld [vmem:[#allocation7 + $0x1d8] sm:$0xff] }
 0x684   : > { %1750 = vmatpush.bf16.msra.mxu2 %v2521_v55 }
 0x685   : > { %v1518_v61 = vadd.f32 %v3240_v33, %v1500_v56 }
 0x686   : > { %v1449_v42 = vpop.f32.mrf.mxu0 }
 0x687   : > { %v1532_v62 = vpack.c.bf16 %v1518_v61, %v1517_v60  ;;  %v1450_v54 = vadd.f32 %v3233_v39, %v1449_v42 }
 0x689   : > { %1619 = vmatmul.bf16.gmra.mxu1 %v1532_v62  ;;  %v1483_v63 = vmax.f32 %v1450_v54, 0.0  ;;  %v2520_v62 = vld [vmem:[#allocation7 + $0x1d0] sm:$0xff] }
 0x68a   : > { %1751 = vmatpush.bf16.msra.mxu2 %v2520_v62 }
 0x68b   : > { %v1501_v13 = vmul.f32 %v3236_v43, %v1483_v63  ;;  %v2519_v63 = vld [vmem:[#allocation7 + $0x1c8] sm:$0xff] }
 0x68d   : > { %v1519_v0 = vadd.f32 %v3240_v33, %v1501_v13 }
 0x68e   : > { %v1451_v11 = vpop.f32.mrf.mxu0  ;;  %1752 = vmatpush.bf16.msra.mxu2 %v2519_v63 }
 0x68f   : > { %v1452_v8 = vadd.f32 %v3233_v39, %v1451_v11 }
 0x691   : > { %v1484_v9 = vmax.f32 %v1452_v8, 0.0 }
 0x693   : > { %v1502_v10 = vmul.f32 %v3236_v43, %v1484_v9  ;;  %v2518_v9 = vld [vmem:[#allocation7 + $0x1c0] sm:$0xff] }
 0x694   : > { %1753 = vmatpush.bf16.msra.mxu2 %v2518_v9  ;;  %v2642_v9 = vld [vmem:[#allocation8 + $0xd] ss:$0 sm:$0xff] }
 0x695   : > { %v1520_v59 = vadd.f32 %v3240_v33, %v1502_v10 }
 0x696   : > { %v1454_v12 = vpop.f32.mrf.mxu0 }
 0x697   : > { %v1533_v1 = vpack.c.bf16 %v1520_v59, %v1519_v0  ;;  %v1455_v2 = vadd.f32 %v3233_v39, %v1454_v12 }
 0x699   : > { %1624 = vmatmul.bf16.gmra.mxu1 %v1533_v1  ;;  %v1485_v4 = vmax.f32 %v1455_v2, 0.0 }
 0x69b   : > { %v1503_v5 = vmul.f32 %v3236_v43, %v1485_v4 }
 0x69d   : > { %v1521_v15 = vadd.f32 %v3240_v33, %v1503_v5 }
 0x69e   : > { %v1456_v58 = vpop.f32.mrf.mxu0 }
 0x69f   : > { %v1457_v18 = vadd.f32 %v3233_v39, %v1456_v58  ;;  %v2641_v58 = vld [vmem:[#allocation8 + $0xc] ss:$0 sm:$0xff] }
 0x6a1   : > { %v1486_v14 = vmax.f32 %v1457_v18, 0.0 }
 0x6a3   : > { %v1504_v57 = vmul.f32 %v3236_v43, %v1486_v14 }
 0x6a5   : > { %v1522_v20 = vadd.f32 %v3240_v33, %v1504_v57 }
 0x6a6   : > { %v1459_v16 = vpop.f32.mrf.mxu0 }
 0x6a7   : > { %v1534_v17 = vpack.c.bf16 %v1522_v20, %v1521_v15  ;;  %v1460_v21 = vadd.f32 %v3233_v39, %v1459_v16 }
 0x6a9   : > { %1629 = vmatmul.bf16.gmra.mxu1 %v1534_v17  ;;  %v1487_v22 = vmax.f32 %v1460_v21, 0.0 }
 0x6ab   : > { %v1505_v30 = vmul.f32 %v3236_v43, %v1487_v22 }
 0x6ad   : > { %v1523_v34 = vadd.f32 %v3240_v33, %v1505_v30 }
 0x6ae   : > { %v1461_v24 = vpop.f32.mrf.mxu0 }
 0x6af   : > { %v1462_v7 = vadd.f32 %v3233_v39, %v1461_v24 }
 0x6b1   : > { %v1488_v31 = vmax.f32 %v1462_v7, 0.0 }
 0x6b3   : > { %v1506_v32 = vmul.f32 %v3236_v43, %v1488_v31 }
 0x6b5   : > { %v1524_v6 = vadd.f32 %v3240_v33, %v1506_v32 }
 0x6b6   : > { %v1464_v35 = vpop.f32.mrf.mxu0 }
 0x6b7   : > { %v1535_v36 = vpack.c.bf16 %v1524_v6, %v1523_v34  ;;  %v1465_v25 = vadd.f32 %v3233_v39, %v1464_v35 }
 0x6b9   : > { %1634 = vmatmul.bf16.gmra.mxu1 %v1535_v36  ;;  %v1489_v29 = vmax.f32 %v1465_v25, 0.0 }
 0x6bb   : > { %v1507_v40 = vmul.f32 %v3236_v43, %v1489_v29 }
 0x6bd   : > { %v1525_v44 = vadd.f32 %v3240_v33, %v1507_v40 }
 0x6be   : > { %v1466_v38 = vpop.f32.mrf.mxu0 }
 0x6bf   : > { %v1467_v3 = vadd.f32 %v3233_v39, %v1466_v38 }
 0x6c1   : > { %v1490_v41 = vmax.f32 %v1467_v3, 0.0 }
 0x6c3   : > { %v1508_v28 = vmul.f32 %v3236_v43, %v1490_v41 }
 0x6c5   : > { %v1526_v45 = vadd.f32 %v3240_v33, %v1508_v28 }
 0x6c6   : > { %v1469_v27 = vpop.f32.mrf.mxu0 }
 0x6c7   : > { %v1536_v47 = vpack.c.bf16 %v1526_v45, %v1525_v44  ;;  %v1470_v48 = vadd.f32 %v3233_v39, %v1469_v27 }
 0x6c9   : > { %1639 = vmatmul.bf16.gmra.mxu1 %v1536_v47  ;;  %v1491_v26 = vmax.f32 %v1470_v48, 0.0 }
 0x6cb   : > { %v1509_v51 = vmul.f32 %v3236_v43, %v1491_v26 }
 0x6cd   : > { %v1527_v56 = vadd.f32 %v3240_v33, %v1509_v51 }
 0x6ce   : > { %v1471_v19 = vpop.f32.mrf.mxu0 }
 0x6cf   : > { %v1472_v50 = vadd.f32 %v3233_v39, %v1471_v19 }
 0x6d1   : > { %v1492_v52 = vmax.f32 %v1472_v50, 0.0 }
 0x6d3   : > { %v1510_v53 = vmul.f32 %v3236_v43, %v1492_v52 }
 0x6d5   : > { %v1528_v60 = vadd.f32 %v3240_v33, %v1510_v53 }
 0x6d6   : > { %v1474_v61 = vpop.f32.mrf.mxu0 }
 0x6d7   : > { %v1537_v42 = vpack.c.bf16 %v1528_v60, %v1527_v56  ;;  %v1475_v54 = vadd.f32 %v3233_v39, %v1474_v61 }
 0x6d9   : > { %1644 = vmatmul.bf16.gmra.mxu1 %v1537_v42  ;;  %v1493_v11 = vmax.f32 %v1475_v54, 0.0 }
 0x6db   : > { %v1511_v10 = vmul.f32 %v3236_v43, %v1493_v11 }
 0x6dd   : > { %v1529_v12 = vadd.f32 %v3240_v33, %v1511_v10 }
 0x6de   : > { %v1476_v8 = vpop.f32.mrf.mxu0 }
 0x6df   : > { %v1477_v13 = vadd.f32 %v3233_v39, %v1476_v8 }
 0x6e1   : > { %v1494_v0 = vmax.f32 %v1477_v13, 0.0 }
 0x6e3   : > { %v1512_v59 = vmul.f32 %v3236_v43, %v1494_v0 }
 0x6e5   : > { %v1530_v1 = vadd.f32 %v3240_v33, %v1512_v59 }
 0x6e7   : > { %v1538_v2 = vpack.c.bf16 %v1530_v1, %v1529_v12 }
 0x6e9   : > { %1649 = vmatmul.bf16.gmra.mxu1 %v1538_v2 }
 0x6f6   : > { %v1615_v4 = vpop.f32.mrf.mxu1 }
 0x6f7   : > { %v1616_v18 = vadd.f32 %v2641_v58, %v1615_v4 }
 0x6f9   : > { %v1655_v57 = vmax.f32 %v1616_v18, 0.0 }
 0x6fe   : > { %v1617_v5 = vpop.f32.mrf.mxu1 }
 0x6ff   : > { %v1618_v14 = vadd.f32 %v2641_v58, %v1617_v5 }
 0x701   : > { %v1656_v39 = vmax.f32 %v1618_v14, 0.0 }
 0x703   : > { %v1671_v15 = vpack.c.bf16 %v1656_v39, %v1655_v57 }
 0x705   : > { %1754 = vmatmul.bf16.vlgmr.msra.gmra.mxu2 %v1671_v15 }
 0x706   : > { %v1620_v20 = vpop.f32.mrf.mxu1 }
 0x707   : > { %v1621_v16 = vadd.f32 %v2641_v58, %v1620_v20 }
 0x709   : > { %v1657_v43 = vmax.f32 %v1621_v16, 0.0 }
 0x70e   : > { %v1622_v17 = vpop.f32.mrf.mxu1 }
 0x70f   : > { %v1623_v21 = vadd.f32 %v2641_v58, %v1622_v17 }
 0x711   : > { %v1658_v22 = vmax.f32 %v1623_v21, 0.0 }
 0x713   : > { %v1672_v23 = vpack.c.bf16 %v1658_v22, %v1657_v43 }
 0x715   : > { %1759 = vmatmul.bf16.gmra.mxu2 %v1672_v23 }
 0x716   : > { %v1625_v33 = vpop.f32.mrf.mxu1 }
 0x717   : > { %v1626_v24 = vadd.f32 %v2641_v58, %v1625_v33 }
 0x719   : > { %v1659_v31 = vmax.f32 %v1626_v24, 0.0 }
 0x71e   : > { %v1627_v7 = vpop.f32.mrf.mxu1 }
 0x71f   : > { %v1628_v30 = vadd.f32 %v2641_v58, %v1627_v7 }
 0x721   : > { %v1660_v32 = vmax.f32 %v1628_v30, 0.0 }
 0x723   : > { %v1673_v34 = vpack.c.bf16 %v1660_v32, %v1659_v31 }
 0x725   : > { %1764 = vmatmul.bf16.gmra.mxu2 %v1673_v34 }
 0x726   : > { %v1630_v6 = vpop.f32.mrf.mxu1 }
 0x727   : > { %v1631_v35 = vadd.f32 %v2641_v58, %v1630_v6 }
 0x729   : > { %v1661_v29 = vmax.f32 %v1631_v35, 0.0 }
 0x72e   : > { %v1632_v36 = vpop.f32.mrf.mxu1 }
 0x72f   : > { %v1633_v25 = vadd.f32 %v2641_v58, %v1632_v36 }
 0x731   : > { %v1662_v37 = vmax.f32 %v1633_v25, 0.0 }
 0x733   : > { %v1674_v38 = vpack.c.bf16 %v1662_v37, %v1661_v29 }
 0x735   : > { %1769 = vmatmul.bf16.gmra.mxu2 %v1674_v38 }
 0x736   : > { %v1635_v3 = vpop.f32.mrf.mxu1 }
 0x737   : > { %v1636_v40 = vadd.f32 %v2641_v58, %v1635_v3 }
 0x739   : > { %v1663_v44 = vmax.f32 %v1636_v40, 0.0 }
 0x73e   : > { %v1637_v41 = vpop.f32.mrf.mxu1 }
 0x73f   : > { %v1638_v28 = vadd.f32 %v2641_v58, %v1637_v41 }
 0x741   : > { %v1664_v45 = vmax.f32 %v1638_v28, 0.0 }
 0x743   : > { %v1675_v46 = vpack.c.bf16 %v1664_v45, %v1663_v44 }
 0x745   : > { %1774 = vmatmul.bf16.gmra.mxu2 %v1675_v46 }
 0x746   : > { %v1640_v27 = vpop.f32.mrf.mxu1 }
 0x747   : > { %v1641_v47 = vadd.f32 %v2641_v58, %v1640_v27 }
 0x749   : > { %v1665_v26 = vmax.f32 %v1641_v47, 0.0 }
 0x74e   : > { %v1642_v48 = vpop.f32.mrf.mxu1 }
 0x74f   : > { %v1643_v49 = vadd.f32 %v2641_v58, %v1642_v48 }
 0x751   : > { %v1666_v19 = vmax.f32 %v1643_v49, 0.0 }
 0x753   : > { %v1676_v50 = vpack.c.bf16 %v1666_v19, %v1665_v26 }
 0x755   : > { %1779 = vmatmul.bf16.gmra.mxu2 %v1676_v50 }
 0x756   : > { %v1645_v51 = vpop.f32.mrf.mxu1 }
 0x757   : > { %v1646_v52 = vadd.f32 %v2641_v58, %v1645_v51 }
 0x759   : > { %v1667_v56 = vmax.f32 %v1646_v52, 0.0 }
 0x75e   : > { %v1647_v53 = vpop.f32.mrf.mxu1 }
 0x75f   : > { %v1648_v55 = vadd.f32 %v2641_v58, %v1647_v53 }
 0x761   : > { %v1668_v60 = vmax.f32 %v1648_v55, 0.0 }
 0x763   : > { %v1677_v61 = vpack.c.bf16 %v1668_v60, %v1667_v56 }
 0x765   : > { %1784 = vmatmul.bf16.gmra.mxu2 %v1677_v61 }
 0x766   : > { %v1650_v42 = vpop.f32.mrf.mxu1 }
 0x767   : > { %v1651_v62 = vadd.f32 %v2641_v58, %v1650_v42 }
 0x769   : > { %v1669_v11 = vmax.f32 %v1651_v62, 0.0 }
 0x76e   : > { %v1652_v54 = vpop.f32.mrf.mxu1 }
 0x76f   : > { %v1653_v63 = vadd.f32 %v2641_v58, %v1652_v54 }
 0x771   : > { %v1670_v8 = vmax.f32 %v1653_v63, 0.0 }
 0x773   : > { %v1678_v13 = vpack.c.bf16 %v1670_v8, %v1669_v11 }
 0x775   : > { %1789 = vmatmul.bf16.gmra.mxu2 %v1678_v13 }
 0x788   : > { %v1755_v10 = vpop.f32.mrf.mxu2 }
 0x789   : > { %v1756_v0 = vadd.f32 %v2642_v9, %v1755_v10 }
 0x78b   : > { %1795 = vmax.xlane.f32.xlu0 %v1756_v0 }
 0x790   : > { %v1757_v59 = vpop.f32.mrf.mxu2 }
 0x791   : > { %v1758_v12 = vadd.f32 %v2642_v9, %v1757_v59 }
 0x793   : > { %1797 = vmax.xlane.f32.xlu0 %v1758_v12 }
 0x798   : > { %v1760_v1 = vpop.f32.mrf.mxu2 }
 0x799   : > { %v1761_v2 = vadd.f32 %v2642_v9, %v1760_v1 }
 0x79b   : > { %1799 = vmax.xlane.f32.xlu1 %v1761_v2 }
 0x7a0   : > { %v1762_v4 = vpop.f32.mrf.mxu2 }
 0x7a1   : > { %v1763_v18 = vadd.f32 %v2642_v9, %v1762_v4 }
 0x7a3   : > { %1801 = vmax.xlane.f32.xlu1 %v1763_v18 }
 0x7a8   : > { %v1765_v5 = vpop.f32.mrf.mxu2 }
 0x7a9   : > { %v1766_v14 = vadd.f32 %v2642_v9, %v1765_v5 }
 0x7ab   : > { %1803 = vmax.xlane.f32.xlu2 %v1766_v14 }
 0x7b0   : > { %v1767_v58 = vpop.f32.mrf.mxu2 }
 0x7b1   : > { %v1768_v57 = vadd.f32 %v2642_v9, %v1767_v58 }
 0x7b3   : > { %1805 = vmax.xlane.f32.xlu2 %v1768_v57 }
 0x7b8   : > { %v1770_v39 = vpop.f32.mrf.mxu2 }
 0x7b9   : > { %v3287_v15 = vadd.f32 %v2642_v9, %v1770_v39 }
 0x7bb   : > { %1807 = vmax.xlane.f32.xlu0 %v3287_v15 }
 0x7c0   : > { %v1772_v20 = vpop.f32.mrf.mxu2 }
 0x7c1   : > { %v3290_v16 = vadd.f32 %v2642_v9, %v1772_v20 }
 0x7c3   : > { %1809 = vmax.xlane.f32.xlu1 %v3290_v16 }
 0x7c8   : > { %v1775_v17 = vpop.f32.mrf.mxu2 }
 0x7c9   : > { %v3293_v21 = vadd.f32 %v2642_v9, %v1775_v17 }
 0x7cb   : > { %1811 = vmax.xlane.f32.xlu2 %v3293_v21 }
 0x7d0   : > { %v1777_v43 = vpop.f32.mrf.mxu2 }
 0x7d1   : > { %v3296_v22 = vadd.f32 %v2642_v9, %v1777_v43 }
 0x7d3   : > { %1813 = vmax.xlane.f32.xlu0 %v3296_v22 }
 0x7d8   : > { %v1780_v23 = vpop.f32.mrf.mxu2 }
 0x7d9   : > { %v3299_v33 = vadd.f32 %v2642_v9, %v1780_v23 }
 0x7db   : > { %1815 = vmax.xlane.f32.xlu1 %v3299_v33 }
 0x7e0   : > { %v1782_v24 = vpop.f32.mrf.mxu2 }
 0x7e1   : > { %v3302_v7 = vadd.f32 %v2642_v9, %v1782_v24 }
 0x7e3   : > { %1817 = vmax.xlane.f32.xlu2 %v3302_v7 }
 0x7e8   : > { %v1785_v30 = vpop.f32.mrf.mxu2 }
 0x7e9   : > { %v3305_v31 = vadd.f32 %v2642_v9, %v1785_v30 }
 0x7eb   : > { %1819 = vmax.xlane.f32.xlu0 %v3305_v31 }
 0x7f0   : > { %v1787_v32 = vpop.f32.mrf.mxu2 }
 0x7f1   : > { %v3308_v34 = vadd.f32 %v2642_v9, %v1787_v32 }
 0x7f3   : > { %1821 = vmax.xlane.f32.xlu1 %v3308_v34 }
 0x7f8   : > { %v1790_v6 = vpop.f32.mrf.mxu2 }
 0x7f9   : > { %v3311_v35 = vadd.f32 %v2642_v9, %v1790_v6 }
 0x7fb   : > { %1823 = vmax.xlane.f32.xlu2 %v3311_v35 }
 0x7fe   : > { %v1796_v36 = vpop.xlane.xlu0 %1795 }
 0x7ff   : > { %v3314_v25 = vsub.f32 %v1756_v0, %v1796_v36 }
 0x800   : > { %v1792_v29 = vpop.f32.mrf.mxu2 }
 0x801   : > { %v1843_v37 = vmul.f32 1.442695, %v3314_v25  ;;  %v3317_v38 = vadd.f32 %v2642_v9, %v1792_v29 }
 0x803   : > { %2643 = vpow2.f32 %v1843_v37  ;;  %1825 = vmax.xlane.f32.xlu0 %v3317_v38 }
 0x806   : > { %v1798_v3 = vpop.xlane.xlu0 %1797 }
 0x807   : > { %v3320_v40 = vsub.f32 %v1758_v12, %v1798_v3 }
 0x809   : > { %v2644_v41 = vpop.eup %2643  ;;  %v1845_v28 = vmul.f32 1.442695, %v3320_v40 }
 0x80a   : > { %1875 = vadd.xlane.f32.xlu1 %v2644_v41 }
 0x80b   : > { %2645 = vpow2.f32 %v1845_v28 }
 0x80e   : > { %v1800_v44 = vpop.xlane.xlu1 %1799 }
 0x80f   : > { %v3323_v45 = vsub.f32 %v1761_v2, %v1800_v44 }
 0x811   : > { %v2646_v46 = vpop.eup %2645  ;;  %v1847_v27 = vmul.f32 1.442695, %v3323_v45 }
 0x812   : > { %1877 = vadd.xlane.f32.xlu2 %v2646_v46 }
 0x813   : > { %2647 = vpow2.f32 %v1847_v27 }
 0x816   : > { %v1802_v47 = vpop.xlane.xlu1 %1801 }
 0x817   : > { %v3326_v48 = vsub.f32 %v1763_v18, %v1802_v47 }
 0x819   : > { %v2648_v49 = vpop.eup %2647  ;;  %v1849_v26 = vmul.f32 1.442695, %v3326_v48 }
 0x81a   : > { %1879 = vadd.xlane.f32.xlu0 %v2648_v49 }
 0x81b   : > { %2649 = vpow2.f32 %v1849_v26 }
 0x81e   : > { %v1804_v19 = vpop.xlane.xlu2 %1803 }
 0x81f   : > { %v3329_v50 = vsub.f32 %v1766_v14, %v1804_v19 }
 0x821   : > { %v2650_v51 = vpop.eup %2649  ;;  %v1851_v52 = vmul.f32 1.442695, %v3329_v50 }
 0x822   : > { %1881 = vadd.xlane.f32.xlu1 %v2650_v51 }
 0x823   : > { %2651 = vpow2.f32 %v1851_v52 }
 0x826   : > { %v1806_v53 = vpop.xlane.xlu2 %1805 }
 0x827   : > { %v3332_v55 = vsub.f32 %v1768_v57, %v1806_v53 }
 0x829   : > { %v2652_v56 = vpop.eup %2651  ;;  %v1853_v60 = vmul.f32 1.442695, %v3332_v55 }
 0x82a   : > { %1883 = vadd.xlane.f32.xlu2 %v2652_v56 }
 0x82b   : > { %2653 = vpow2.f32 %v1853_v60 }
 0x82e   : > { %v1808_v61 = vpop.xlane.xlu0 %1807 }
 0x82f   : > { %v3336_v42 = vsub.f32 %v3287_v15, %v1808_v61 }
 0x831   : > { %v2654_v62 = vpop.eup %2653  ;;  %v1855_v54 = vmul.f32 1.442695, %v3336_v42 }
 0x832   : > { %1885 = vadd.xlane.f32.xlu0 %v2654_v62 }
 0x833   : > { %2655 = vpow2.f32 %v1855_v54 }
 0x836   : > { %v1810_v63 = vpop.xlane.xlu1 %1809 }
 0x837   : > { %v3340_v11 = vsub.f32 %v3290_v16, %v1810_v63 }
 0x839   : > { %v2656_v8 = vpop.eup %2655  ;;  %v1857_v13 = vmul.f32 1.442695, %v3340_v11 }
 0x83a   : > { %1887 = vadd.xlane.f32.xlu1 %v2656_v8 }
 0x83b   : > { %2657 = vpow2.f32 %v1857_v13 }
 0x83e   : > { %v1812_v9 = vpop.xlane.xlu2 %1811 }
 0x83f   : > { %v3344_v10 = vsub.f32 %v3293_v21, %v1812_v9 }
 0x841   : > { %v2658_v0 = vpop.eup %2657  ;;  %v1859_v59 = vmul.f32 1.442695, %v3344_v10 }
 0x842   : > { %1889 = vadd.xlane.f32.xlu2 %v2658_v0 }
 0x843   : > { %2659 = vpow2.f32 %v1859_v59 }
 0x846   : > { %v1814_v12 = vpop.xlane.xlu0 %1813 }
 0x847   : > { %v3348_v1 = vsub.f32 %v3296_v22, %v1814_v12 }
 0x849   : > { %v2660_v2 = vpop.eup %2659  ;;  %v1861_v4 = vmul.f32 1.442695, %v3348_v1 }
 0x84a   : > { %1891 = vadd.xlane.f32.xlu0 %v2660_v2 }
 0x84b   : > { %2661 = vpow2.f32 %v1861_v4 }
 0x84e   : > { %v1816_v18 = vpop.xlane.xlu1 %1815 }
 0x84f   : > { %v3352_v5 = vsub.f32 %v3299_v33, %v1816_v18 }
 0x851   : > { %v2662_v14 = vpop.eup %2661  ;;  %v1863_v58 = vmul.f32 1.442695, %v3352_v5 }
 0x852   : > { %1893 = vadd.xlane.f32.xlu1 %v2662_v14 }
 0x853   : > { %2663 = vpow2.f32 %v1863_v58 }
 0x856   : > { %v1818_v57 = vpop.xlane.xlu2 %1817 }
 0x857   : > { %v3356_v39 = vsub.f32 %v3302_v7, %v1818_v57 }
 0x859   : > { %v2664_v15 = vpop.eup %2663  ;;  %v1865_v20 = vmul.f32 1.442695, %v3356_v39 }
 0x85a   : > { %1895 = vadd.xlane.f32.xlu2 %v2664_v15 }
 0x85b   : > { %2665 = vpow2.f32 %v1865_v20 }
 0x85e   : > { %v1820_v16 = vpop.xlane.xlu0 %1819 }
 0x85f   : > { %v3360_v17 = vsub.f32 %v3305_v31, %v1820_v16 }
 0x861   : > { %v2666_v21 = vpop.eup %2665  ;;  %v1867_v43 = vmul.f32 1.442695, %v3360_v17 }
 0x862   : > { %1897 = vadd.xlane.f32.xlu0 %v2666_v21 }
 0x863   : > { %2667 = vpow2.f32 %v1867_v43 }
 0x866   : > { %v1822_v22 = vpop.xlane.xlu1 %1821 }
 0x867   : > { %v3364_v23 = vsub.f32 %v3308_v34, %v1822_v22 }
 0x869   : > { %v2668_v33 = vpop.eup %2667  ;;  %v1869_v24 = vmul.f32 1.442695, %v3364_v23 }
 0x86a   : > { %1899 = vadd.xlane.f32.xlu1 %v2668_v33 }
 0x86b   : > { %2669 = vpow2.f32 %v1869_v24 }
 0x86e   : > { %v1824_v7 = vpop.xlane.xlu2 %1823 }
 0x86f   : > { %v3368_v30 = vsub.f32 %v3311_v35, %v1824_v7 }
 0x871   : > { %v2670_v31 = vpop.eup %2669  ;;  %v1871_v32 = vmul.f32 1.442695, %v3368_v30 }
 0x872   : > { %1901 = vadd.xlane.f32.xlu2 %v2670_v31 }
 0x873   : > { %2671 = vpow2.f32 %v1871_v32 }
 0x876   : > { %v1826_v6 = vpop.xlane.xlu0 %1825 }
 0x877   : > { %v3372_v36 = vsub.f32 %v3317_v38, %v1826_v6 }
 0x879   : > { %v2672_v34 = vpop.eup %2671  ;;  %v1873_v29 = vmul.f32 1.442695, %v3372_v36 }
 0x87a   : > { %1903 = vadd.xlane.f32.xlu0 %v2672_v34 }
 0x87b   : > { %2673 = vpow2.f32 %v1873_v29 }
 0x87d   : > { %v1876_v37 = vpop.xlane.xlu1 %1875 }
 0x87e   : > { %2675 = vlog2.f32 %v1876_v37 }
 0x881   : > { %v2674_v3 = vpop.eup %2673 }
 0x882   : > { %1905 = vadd.xlane.f32.xlu1 %v2674_v3 }
 0x884   : > { %v2676_v35 = vpop.eup %2675 }
 0x885   : > { %v1908_v41 = vmul.f32 0.6931472, %v2676_v35  ;;  %v1878_v28 = vpop.xlane.xlu2 %1877 }
 0x886   : > { %2677 = vlog2.f32 %v1878_v28 }
 0x887   : > { %v1939_v44 = vsub.f32 %v3314_v25, %v1908_v41 }
 0x889   : > { %1955 = vst [vmem:[%s3377_s10] sm:$0xff] %v1939_v44 }
 0x88c   : > { %v2678_v38 = vpop.eup %2677 }
 0x88d   : > { %v1910_v46 = vmul.f32 0.6931472, %v2678_v38  ;;  %v1880_v27 = vpop.xlane.xlu0 %1879 }
 0x88e   : > { %2679 = vlog2.f32 %v1880_v27 }
 0x88f   : > { %v1940_v47 = vsub.f32 %v3320_v40, %v1910_v46 }
 0x891   : > { %1956 = vst [vmem:[%s3377_s10 + $0x8] sm:$0xff] %v1940_v47 }
 0x894   : > { %v2680_v49 = vpop.eup %2679 }
 0x895   : > { %v1912_v26 = vmul.f32 0.6931472, %v2680_v49  ;;  %v1882_v19 = vpop.xlane.xlu1 %1881 }
 0x896   : > { %2681 = vlog2.f32 %v1882_v19 }
 0x897   : > { %v1941_v25 = vsub.f32 %v3323_v45, %v1912_v26 }
 0x899   : > { %1957 = vst [vmem:[%s3377_s10 + $0x10] sm:$0xff] %v1941_v25 }
 0x89c   : > { %v2682_v51 = vpop.eup %2681 }
 0x89d   : > { %v1914_v52 = vmul.f32 0.6931472, %v2682_v51  ;;  %v1884_v53 = vpop.xlane.xlu2 %1883 }
 0x89e   : > { %2683 = vlog2.f32 %v1884_v53 }
 0x89f   : > { %v1942_v56 = vsub.f32 %v3326_v48, %v1914_v52 }
 0x8a1   : > { %1958 = vst [vmem:[%s3377_s10 + $0x18] sm:$0xff] %v1942_v56 }
 0x8a4   : > { %v2684_v60 = vpop.eup %2683 }
 0x8a5   : > { %v1916_v61 = vmul.f32 0.6931472, %v2684_v60  ;;  %v1886_v40 = vpop.xlane.xlu0 %1885 }
 0x8a6   : > { %2685 = vlog2.f32 %v1886_v40 }
 0x8a7   : > { %v1943_v62 = vsub.f32 %v3329_v50, %v1916_v61 }
 0x8a9   : > { %1959 = vst [vmem:[%s3377_s10 + $0x20] sm:$0xff] %v1943_v62 }
 0x8ac   : > { %v2686_v54 = vpop.eup %2685 }
 0x8ad   : > { %v1918_v63 = vmul.f32 0.6931472, %v2686_v54  ;;  %v1888_v45 = vpop.xlane.xlu1 %1887 }
 0x8ae   : > { %2687 = vlog2.f32 %v1888_v45 }
 0x8af   : > { %v1944_v8 = vsub.f32 %v3332_v55, %v1918_v63 }
 0x8b1   : > { %1960 = vst [vmem:[%s3377_s10 + $0x28] sm:$0xff] %v1944_v8 }
 0x8b4   : > { %v2688_v13 = vpop.eup %2687 }
 0x8b5   : > { %v1920_v9 = vmul.f32 0.6931472, %v2688_v13  ;;  %v1890_v48 = vpop.xlane.xlu2 %1889 }
 0x8b6   : > { %2689 = vlog2.f32 %v1890_v48 }
 0x8b7   : > { %v1945_v0 = vsub.f32 %v3336_v42, %v1920_v9 }
 0x8b9   : > { %1961 = vst [vmem:[%s3377_s10 + $0x30] sm:$0xff] %v1945_v0 }
 0x8bc   : > { %v2690_v59 = vpop.eup %2689 }
 0x8bd   : > { %v1922_v12 = vmul.f32 0.6931472, %v2690_v59  ;;  %v1892_v50 = vpop.xlane.xlu0 %1891 }
 0x8be   : > { %2691 = vlog2.f32 %v1892_v50 }
 0x8bf   : > { %v1946_v2 = vsub.f32 %v3340_v11, %v1922_v12 }
 0x8c1   : > { %1962 = vst [vmem:[%s3377_s10 + $0x38] sm:$0xff] %v1946_v2 }
 0x8c4   : > { %v2692_v4 = vpop.eup %2691 }
 0x8c5   : > { %v1924_v18 = vmul.f32 0.6931472, %v2692_v4  ;;  %v1894_v55 = vpop.xlane.xlu1 %1893 }
 0x8c6   : > { %2693 = vlog2.f32 %v1894_v55 }
 0x8c7   : > { %v1947_v14 = vsub.f32 %v3344_v10, %v1924_v18 }
 0x8c9   : > { %1963 = vst [vmem:[%s3377_s10 + $0x40] sm:$0xff] %v1947_v14 }
 0x8cc   : > { %v2694_v58 = vpop.eup %2693 }
 0x8cd   : > { %v1926_v57 = vmul.f32 0.6931472, %v2694_v58  ;;  %v1896_v42 = vpop.xlane.xlu2 %1895 }
 0x8ce   : > { %2695 = vlog2.f32 %v1896_v42 }
 0x8cf   : > { %v1948_v15 = vsub.f32 %v3348_v1, %v1926_v57 }
 0x8d1   : > { %1964 = vst [vmem:[%s3377_s10 + $0x48] sm:$0xff] %v1948_v15 }
 0x8d4   : > { %v2696_v20 = vpop.eup %2695 }
 0x8d5   : > { %v1928_v16 = vmul.f32 0.6931472, %v2696_v20  ;;  %v1898_v11 = vpop.xlane.xlu0 %1897 }
 0x8d6   : > { %2697 = vlog2.f32 %v1898_v11 }
 0x8d7   : > { %v1949_v21 = vsub.f32 %v3352_v5, %v1928_v16 }
 0x8d9   : > { %1965 = vst [vmem:[%s3377_s10 + $0x50] sm:$0xff] %v1949_v21 }
 0x8dc   : > { %v2698_v43 = vpop.eup %2697 }
 0x8dd   : > { %v1930_v22 = vmul.f32 0.6931472, %v2698_v43  ;;  %v1900_v10 = vpop.xlane.xlu1 %1899 }
 0x8de   : > { %2699 = vlog2.f32 %v1900_v10 }
 0x8df   : > { %v1950_v33 = vsub.f32 %v3356_v39, %v1930_v22 }
 0x8e1   : > { %1966 = vst [vmem:[%s3377_s10 + $0x58] sm:$0xff] %v1950_v33 }
 0x8e4   : > { %v2700_v24 = vpop.eup %2699 }
 0x8e5   : > { %v1932_v1 = vmul.f32 0.6931472, %v2700_v24  ;;  %v1902_v7 = vpop.xlane.xlu2 %1901 }
 0x8e6   : > { %2701 = vlog2.f32 %v1902_v7 }
 0x8e7   : > { %v1951_v31 = vsub.f32 %v3360_v17, %v1932_v1 }
 0x8e9   : > { %1967 = vst [vmem:[%s3377_s10 + $0x60] sm:$0xff] %v1951_v31 }
 0x8ec   : > { %v2702_v5 = vpop.eup %2701 }
 0x8ed   : > { %v1934_v32 = vmul.f32 0.6931472, %v2702_v5  ;;  %v1904_v6 = vpop.xlane.xlu0 %1903 }
 0x8ee   : > { %2703 = vlog2.f32 %v1904_v6 }
 0x8ef   : > { %v1952_v34 = vsub.f32 %v3364_v23, %v1934_v32 }
 0x8f1   : > { %1968 = vst [vmem:[%s3377_s10 + $0x68] sm:$0xff] %v1952_v34 }
 0x8f4   : > { %v2704_v39 = vpop.eup %2703 }
 0x8f5   : > { %v1936_v29 = vmul.f32 0.6931472, %v2704_v39  ;;  %v1906_v37 = vpop.xlane.xlu1 %1905 }
 0x8f6   : > { %2705 = vlog2.f32 %v1906_v37 }
 0x8f7   : > { %v1953_v3 = vsub.f32 %v3368_v30, %v1936_v29 }
 0x8f9   : > { %1969 = vst [vmem:[%s3377_s10 + $0x70] sm:$0xff] %v1953_v3 }
 0x8fc   : > { %v2706_v17 = vpop.eup %2705 }
 0x8fd   : > { %v1938_v23 = vmul.f32 0.6931472, %v2706_v17 }
 0x8ff   : > { %v1954_v35 = vsub.f32 %v3372_v36, %v1938_v23 }
 0x901   : > { %1970 = vst [vmem:[%s3377_s10 + $0x78] sm:$0xff] %v1954_v35 }
 0x902   : > { %2854 = shalt.err (!%p2851_p10)
}
 0x903   : > { %s2913_s25 = smov 128   ;;  %s2914_s8 = smov 8  }
 0x904   : > { %2563 = dma.vmem_to_hbm [thread:$0]  (%p3011_p3), %s1985_s30, 2048, %s1987_s11, %s1972_s2, %s2913_s25, %s2913_s25, %s2914_s8  }
 0x905 PF: > { %p2588_p11 = scmp.ge.s32.totalorder %s2905_s18, 2  ;;  %s2001_s6 = sand.u32 1, %s2893_s15  }
 0x906   : > { %s2002_s26 = scalar_lea.sflag [#allocation4], %s2001_s6 }
 0x907   : > { %p2580_p12 = pnand %p2588_p11, %p2975_p6 }
 0x909   : > { %p2581_p13 = pneg %p2580_p12 }
 0x90b   : > { %2888 = dma.done.wait (%p2581_p13), %s2002_s26, 2048  }
 0x90c   : > { %2890 = vsyncadd (%p2581_p13), %s2002_s26, 4294965248  ;;  %p21_p0 = scmp.ge.s32.totalorder %s2998_s12, 6   ;;  %s3465_s15 = smov %s2897_s16 }
 0x90d   : > { %s3466_s16 = smov %s2901_s17  ;;  %s3467_s17 = smov %s3007_s20 }
 0x90e   : > { %s3468_s18 = smov %s2998_s12  ;;  %23 = sbr.rel (!%p21_p0) target bundleno = 12 (0xc), region = 109 }
 0x913   :  { %2008 = vsyncpa [#allocation3], 1 }
 0x914   :  { %2010 = vsyncpa [#allocation3 + $0x1], 1 }
 0x915   :  { %2011 = vsyncpa [#allocation6], 1 }
 0x916   :  { %2013 = vsyncpa [#allocation6 + $0x1], 1 }
 0x917   :  { %2014 = vsyncpa [#allocation9], 1 }
 0x918   :  { %2015 = vsyncpa [#allocation4], 1 }
 0x919   :  { %2017 = vsyncpa [#allocation4 + $0x1], 1 }

</bundles_post_ra>
